<compile_context>
chip_gen: v5e
topology: v5e:2x2
jax: 0.10.0
libtpu: 0.0.40
codegen_flags: <defaults>
</compile_context>

<pallas_src>
import functools

import jax
import jax.numpy as jnp
from jax.experimental import pallas as pl
from jax.experimental.pallas import tpu as pltpu

NEG_SLOPE = 0.3
BN_EPS = 1e-5
PAD = 128   # zero halo (in lanes) on each side of the flat spatial axis; must be >= W.
            # 128 keeps the center store and the halo zero-fills lane-aligned.


# --------------------------------------------------------------------------
# Fused Pallas kernel: one (batch, repeat) grid step.
# --------------------------------------------------------------------------
def _mbblock_repeat_kernel(x_ref, w1_ref, w9_ref, w3_ref, b2_ref, b3_ref, xmask_ref,
                           o_ref, carry_ref, hp_ref, *,
                           n_rep, W, pad, final_skip_con, any_skip):
    # Layout: channels on sublanes, flattened H*W (= M) on the 128-lane axis.
    #   x_ref    : (1, Cin, M)        input activations (consumed at r == 0 only)
    #   w1_ref   : (1, Cmid, Cin+1)   BN-scale-folded pw1 weight, BN bias as last column
    #   w9_ref   : (1, Cmid, 9)       BN-scale-folded depthwise taps, k = 3*(dy+1)+(dx+1)
    #   w3_ref   : (1, Cout, Cmid)    BN-scale-folded pw2 weight
    #   b2_ref   : (1, Cmid, 1), b3_ref : (1, Cout, 1)  remaining BN biases
    #   xmask_ref: (3, M)             row-wrap validity masks for dx = -1, 0, +1
    #   o_ref    : (1, Cout, M)       written only on the last repeat
    #   carry_ref: (Cin+1, M) f32     repeat carry; last row is a constant 1 (bias fold)
    #   hp_ref   : (Cmid, M+2*pad) f32  zero-halo scratch for the depthwise slabs
    r = pl.program_id(1)
    M = o_ref.shape[-1]
    Cin = x_ref.shape[1]
    Cout = o_ref.shape[1]
    mm_dtype = w1_ref.dtype

    def lrelu(v):                            # max(v, 0.3*v) == LeakyReLU(0.3)
        return jnp.maximum(v, NEG_SLOPE * v)

    # ---- per-batch init (first repeat only): zero just the halo columns (the center is
    #      fully rewritten every repeat before it is read) and load x into the carry.
    #      Guarded on the repeat ("arbitrary") axis so it stays correct when the batch
    #      ("parallel") axis is sharded across megacore TensorCores.
    @pl.when(r == 0)
    def _init():
        zero_halo = jnp.zeros((hp_ref.shape[0], pad), dtype=hp_ref.dtype)
        hp_ref[:, :pad] = zero_halo
        hp_ref[:, pad + M:] = zero_halo
        carry_ref[:Cin, :] = x_ref[0].astype(carry_ref.dtype)
        carry_ref[Cin:, :] = jnp.ones((carry_ref.shape[0] - Cin, M), carry_ref.dtype)

    cur = carry_ref[...]                                           # (Cin+1, M), f32

    # ---- pointwise expand: BN scale folded into the weight, BN bias folded in as the
    #      extra contraction column against the constant-1 carry row (free on the MXU).
    h = jnp.dot(w1_ref[0], cur.astype(mm_dtype),
                preferred_element_type=jnp.float32)                # (Cmid, M)
    h = lrelu(h)

    # ---- depthwise 3x3 'same' on the flattened spatial axis:
    #      3 dy-slabs (y-edges come from the zero halo; dy=0 reuses the live value),
    #      dx = +-1 taps via two XLU lane-rolls of the dy-summed slabs, x-edge wrap lanes
    #      (including the roll wrap-around) zeroed by the precomputed masks.
    hp_ref[:, pad:pad + M] = h
    w9 = w9_ref[0]                                                 # (Cmid, 9)
    s_l = s_c = s_r = None
    for dy in (-1, 0, 1):
        slab = h if dy == 0 else hp_ref[:, pad + dy * W: pad + dy * W + M]
        k = (dy + 1) * 3
        tl = slab * w9[:, k + 0:k + 1]
        tc = slab * w9[:, k + 1:k + 2]
        tr = slab * w9[:, k + 2:k + 3]
        s_l = tl if s_l is None else s_l + tl
        s_c = tc if s_c is None else s_c + tc
        s_r = tr if s_r is None else s_r + tr
    xmask = xmask_ref[...]                                         # (3, M)
    acc = (pltpu.roll(s_l, 1, axis=1) * xmask[0:1, :]              # dx = -1 taps
           + s_c                                                   # dx =  0 taps
           + pltpu.roll(s_r, M - 1, axis=1) * xmask[2:3, :])       # dx = +1 taps
    h = lrelu(acc + b2_ref[0])                                     # (Cmid, M)

    # ---- pointwise project + bias + LeakyReLU (+ residual from the carry).
    y = jnp.dot(w3_ref[0], h.astype(mm_dtype),
                preferred_element_type=jnp.float32)                # (Cout, M)
    y = lrelu(y + b3_ref[0])
    if final_skip_con:                       # residual on every repeat
        y = y + cur[:Cout, :]
    elif any_skip:                           # residual on all but the last repeat
        gate = (r < n_rep - 1).astype(jnp.float32)
        y = y + gate * cur[:Cout, :]

    if n_rep > 1:
        @pl.when(r < n_rep - 1)
        def _store_carry():
            carry_ref[:Cin, :] = y           # Cout == Cin for non-final repeats (asserted)

    @pl.when(r == n_rep - 1)
    def _store_out():
        o_ref[0] = y.astype(o_ref.dtype)


# --------------------------------------------------------------------------
# Wrapper
# --------------------------------------------------------------------------
def _pack_kernel_params(params, matmul_dtype):
    """Fold BN scale into conv weights, fold the pw1 BN bias in as an extra weight column
    (contracted against the carry's constant-1 row), transpose to kernel layout, stack."""
    w1ts, w9s, w3ts, b2s, b3s = [], [], [], [], []
    for p in params:
        w1t = (p['w1'] * p['s1'][None, :]).T                                 # (Cmid, Cin)
        w1ts.append(jnp.concatenate([w1t, p['b1'][:, None]], axis=1)
                    .astype(matmul_dtype))                                   # (Cmid, Cin+1)
        w9s.append((p['w9'] * p['s2'][None, :]).T)                           # (Cmid, 9) f32
        w3ts.append(((p['w3'] * p['s3'][None, :]).T).astype(matmul_dtype))   # (Cout, Cmid)
        b2s.append(p['b2'].reshape(-1, 1))                                   # (Cmid, 1)
        b3s.append(p['b3'].reshape(-1, 1))                                   # (Cout, 1)
    return (jnp.stack(w1ts), jnp.stack(w9s), jnp.stack(w3ts),
            jnp.stack(b2s), jnp.stack(b3s))


def mbblock_forward(params, x_nchw, final_skip_con, *, matmul_dtype=jnp.float32):
    """Fused MBblock forward (eval mode).  Input/output are NCHW; the kernel works on
    flattened NCHW (channels on sublanes, H*W on the lane axis) so no transposes."""
    N, Cin, H, W = x_nchw.shape
    M = H * W
    n = len(params)
    Cmid = params[0]['w1'].shape[1]
    Cout = params[-1]['w3'].shape[1]
    # TODO(synk): out_features != in_features with n > 1 needs the last repeat's pw2
    # weight handled separately (different Cout); the residual configuration used here
    # (out == in, no pool) keeps every repeat's Cout equal.
    assert all(p['w3'].shape[1] == Cout for p in params), "fused kernel assumes equal Cout"
    any_skip = final_skip_con or (n > 1)
    if any_skip:
        assert Cout == Cin, "residual add requires out_features == in_features"
    assert PAD >= W, "halo pad must cover one image row"

    w1ts, w9s, w3ts, b2s, b3s = _pack_kernel_params(params, matmul_dtype)

    # Row-wrap validity masks for the flattened-spatial depthwise taps (dx = -1, 0, +1);
    # they also zero exactly the lanes touched by the pltpu.roll wrap-around.
    col = jnp.arange(M, dtype=jnp.int32) % W
    xmask = jnp.stack([(col >= 1).astype(jnp.float32),
                       jnp.ones((M,), jnp.float32),
                       (col <= W - 2).astype(jnp.float32)])                  # (3, M)

    x_flat = x_nchw.reshape(N, Cin, M)   # free reshape: flattened NCHW, spatial on lanes

    kernel = functools.partial(_mbblock_repeat_kernel, n_rep=n, W=W, pad=PAD,
                               final_skip_con=bool(final_skip_con), any_skip=any_skip)

    itemsize = jnp.dtype(x_nchw.dtype).itemsize
    wbytes = jnp.dtype(matmul_dtype).itemsize
    # Rough per-core VMEM need: scratches + double-buffered pipeline blocks, with margin.
    est = ((Cin + 1) * M * 4 + Cmid * (M + 2 * PAD) * 4
           + 2 * (Cin + Cout) * M * itemsize
           + 2 * (Cmid * (Cin + 1) + Cout * Cmid) * wbytes
           + 2 * (Cmid * 9 + Cmid + Cout) * 4
           + 3 * M * 4)
    vmem_limit = int(min(max(2 * est + (4 << 20), 32 << 20), 64 << 20))
    # TODO(synk): for production H*W add an inner spatial row-tile grid axis (1-row halo,
    # recomputed pw1 halo rows) so hp_ref scales as Cmid*tile instead of Cmid*H*W (v7x has
    # only 64 MiB VMEM) and the grid gets long enough to hide prologue/epilogue DMA.

    out = pl.pallas_call(
        kernel,
        out_shape=jax.ShapeDtypeStruct((N, Cout, M), x_nchw.dtype),
        grid=(N, n),                                                # (batch, repeat)
        in_specs=[
            pl.BlockSpec((1, Cin, M), lambda b, r: (b, 0, 0)),      # x: 1 HBM read / batch
            pl.BlockSpec((1, Cmid, Cin + 1), lambda b, r: (r, 0, 0)),  # per-repeat weights:
            pl.BlockSpec((1, Cmid, 9), lambda b, r: (r, 0, 0)),        #  2 buffers live,
            pl.BlockSpec((1, Cout, Cmid), lambda b, r: (r, 0, 0)),     #  next repeat is
            pl.BlockSpec((1, Cmid, 1), lambda b, r: (r, 0, 0)),        #  prefetched behind
            pl.BlockSpec((1, Cout, 1), lambda b, r: (r, 0, 0)),        #  compute
            pl.BlockSpec((3, M), lambda b, r: (0, 0)),
        ],
        out_specs=pl.BlockSpec((1, Cout, M), lambda b, r: (b, 0, 0)),  # lane-dense store
        scratch_shapes=[pltpu.VMEM((Cin + 1, M), jnp.float32),         # repeat carry (+1s row)
                        pltpu.VMEM((Cmid, M + 2 * PAD), jnp.float32)], # depthwise halo scratch
        compiler_params=pltpu.CompilerParams(
            dimension_semantics=("parallel", "arbitrary"),
            vmem_limit_bytes=vmem_limit),
    )(x_flat, w1ts, w9s, w3ts, b2s, b3s, xmask)
    return out.reshape(N, Cout, H, W)


# --------------------------------------------------------------------------
# Parameter setup (plain JAX glue: init + SVD orthogonalization of pointwise weights)
# --------------------------------------------------------------------------
def orthogonalize(w):
    # myMatmul semantics: polar factor u @ vh; if out > in, column-normalize.
    u, _, vh = jnp.linalg.svd(w, full_matrices=False)
    mat = u @ vh
    if w.shape[1] > w.shape[0]:
        mat = mat / (jnp.linalg.norm(mat, axis=0, keepdims=True) + 1e-10)
    return mat


def _bn_scale_bias(c):
    # eval-mode BN with running_mean=0, running_var=1, gamma=1, beta=1 (bias_init_to_1)
    scale = jnp.full((c,), 1.0 / jnp.sqrt(1.0 + BN_EPS), jnp.float32)
    bias = jnp.ones((c,), jnp.float32)
    return scale, bias


def init_mbblock_params(key, n, in_features, out_features, expand=4, final_pool=None):
    # NOTE: deterministic synthetic init (kaiming-uniform-like scaling); not a checkpoint.
    cmid = in_features * expand
    final_skip_con = (out_features == in_features) and (final_pool is None)
    params = []
    for i in range(n):
        cout = in_features if i < n - 1 else out_features
        key, k1, k2, k3 = jax.random.split(key, 4)
        w1 = jax.random.uniform(k1, (in_features, cmid), jnp.float32, -1.0, 1.0) \
            * (6.0 / in_features) ** 0.5
        wdw = jax.random.uniform(k2, (cmid, 1, 3, 3), jnp.float32, -1.0, 1.0) \
            * (1.0 / 9.0) ** 0.5
        w3 = jax.random.uniform(k3, (cmid, cout), jnp.float32, -1.0, 1.0) \
            * (6.0 / cmid) ** 0.5
        s1, b1 = _bn_scale_bias(cmid)
        s2, b2 = _bn_scale_bias(cmid)
        s3, b3 = _bn_scale_bias(cout)
        params.append(dict(
            w1=orthogonalize(w1),                              # (Cin, Cmid)
            w9=jnp.transpose(wdw.reshape(cmid, 9)),            # (9, Cmid), w9[k,c]=wdw[c,0,k//3,k%3]
            w3=orthogonalize(w3),                              # (Cmid, Cout)
            s1=s1, b1=b1, s2=s2, b2=b2, s3=s3, b3=b3,
        ))
    return params, final_skip_con


# --------------------------------------------------------------------------
# Pure-JAX reference (unfolded BN, NHWC math) for correctness checking
# --------------------------------------------------------------------------
def mbblock_reference(params, x_nchw, final_skip_con):
    x = jnp.transpose(x_nchw, (0, 2, 3, 1))
    last = x
    n = len(params)
    lrelu = lambda v: jnp.where(v >= 0, v, NEG_SLOPE * v)
    for i, p in enumerate(params):
        h = lrelu(jnp.einsum('nhwc,cd->nhwd', x, p['w1']) * p['s1'] + p['b1'])
        hp = jnp.pad(h, ((0, 0), (1, 1), (1, 1), (0, 0)))
        H, W = h.shape[1], h.shape[2]
        acc = jnp.zeros_like(h)
        for dy in range(3):
            for dx in range(3):
                acc = acc + hp[:, dy:dy + H, dx:dx + W, :] * p['w9'][dy * 3 + dx]
        h = lrelu(acc * p['s2'] + p['b2'])
        h = lrelu(jnp.einsum('nhwc,cd->nhwd', h, p['w3']) * p['s3'] + p['b3'])
        if (i < n - 1) or final_skip_con:
            h = h + last
        x = h
        last = x
    return jnp.transpose(x, (0, 3, 1, 2))


# --------------------------------------------------------------------------
if __name__ == "__main__":
    # TODO(synk): training-mode semantics (in-place SVD weight rewrite, BN batch stats)
    # are not modeled; this implements the deterministic eval-mode forward.
    key = jax.random.PRNGKey(0)
    n_repeats, in_f, out_f, expand = 2, 8, 8, 4
    N, H, W = 2, 16, 16

    kx, kp = jax.random.split(key)
    x_nchw = jax.random.normal(kx, (N, in_f, H, W), jnp.float32)
    params, final_skip = init_mbblock_params(kp, n_repeats, in_f, out_f, expand)

    # float32 path (f32 MXU operands): tight check against the pure-JAX reference.
    out = jax.block_until_ready(mbblock_forward(params, x_nchw, final_skip))
    ref = mbblock_reference(params, x_nchw, final_skip)
    assert out.shape == (N, out_f, H, W), out.shape
    max_ref = float(jnp.max(jnp.abs(ref)))
    max_err = float(jnp.max(jnp.abs(out - ref)))
    assert max_err < 1e-4 * max_ref + 1e-3, f"f32 mismatch vs reference: {max_err}"

    # bfloat16 path: bf16 activations in HBM and bf16 MXU operands (f32 accumulation and
    # f32 VPU epilogues inside the kernel) -- halves activation + weight DMA traffic.
    x_bf16 = x_nchw.astype(jnp.bfloat16)
    out_bf = jax.block_until_ready(
        mbblock_forward(params, x_bf16, final_skip, matmul_dtype=jnp.bfloat16))
    ref_bf = mbblock_reference(params, x_bf16.astype(jnp.float32), final_skip)
    max_ref_bf = float(jnp.max(jnp.abs(ref_bf)))
    err_bf = float(jnp.max(jnp.abs(out_bf.astype(jnp.float32) - ref_bf)))
    assert err_bf < 3e-2 * max_ref_bf + 0.1, f"bf16 mismatch vs reference: {err_bf}"

    print("KERNEL_OK")
</pallas_src>

<mosaic_0001>
module attributes {stable_mosaic.version = 11 : i64} {
  func.func @_mbblock_repeat_kernel(%arg0: i32, %arg1: i32, %arg2: memref<1x8x256xf32, #tpu.memory_space<vmem>>, %arg3: memref<1x32x9xf32, #tpu.memory_space<vmem>>, %arg4: memref<1x32x9xf32, #tpu.memory_space<vmem>>, %arg5: memref<1x8x32xf32, #tpu.memory_space<vmem>>, %arg6: memref<1x32x1xf32, #tpu.memory_space<vmem>>, %arg7: memref<1x8x1xf32, #tpu.memory_space<vmem>>, %arg8: memref<3x256xf32, #tpu.memory_space<vmem>>, %arg9: memref<1x8x256xf32, #tpu.memory_space<vmem>>, %arg10: memref<9x256xf32, #tpu.memory_space<vmem>>, %arg11: memref<32x512xf32, #tpu.memory_space<vmem>>) attributes {dimension_semantics = [#tpu.dimension_semantics<parallel>, #tpu.dimension_semantics<arbitrary>], iteration_bounds = array<i64: 2, 2>, scalar_prefetch = 0 : i64, scratch_operands = 2 : i64, tpu.core_type = #tpu.core_type<tc>, window_params = [{transform_indices = @transform_0, window_bounds = array<i64: 1, 8, 256>}, {transform_indices = @transform_1, window_bounds = array<i64: 1, 32, 9>}, {transform_indices = @transform_2, window_bounds = array<i64: 1, 32, 9>}, {transform_indices = @transform_3, window_bounds = array<i64: 1, 8, 32>}, {transform_indices = @transform_4, window_bounds = array<i64: 1, 32, 1>}, {transform_indices = @transform_5, window_bounds = array<i64: 1, 8, 1>}, {pipeline_mode = #tpu.pipeline_mode<synchronous>, transform_indices = @transform_6, window_bounds = array<i64: 3, 256>}, {transform_indices = @transform_7, window_bounds = array<i64: 1, 8, 256>}]} {
    %c0_i32 = arith.constant 0 : i32
    %0 = arith.cmpi eq, %arg1, %c0_i32 : i32
    %1 = arith.extui %0 : i1 to i32
    %c0_i32_0 = arith.constant 0 : i32
    %2 = arith.cmpi ne, %1, %c0_i32_0 : i32
    scf.if %2 {
      %cst_30 = arith.constant 0.000000e+00 : f32
      %84 = vector.broadcast %cst_30 : f32 to vector<32x128xf32>
      %c0_31 = arith.constant 0 : index
      %c0_32 = arith.constant 0 : index
      %85 = vector.load %arg11[%c0_31, %c0_32] : memref<32x512xf32, #tpu.memory_space<vmem>>, vector<32x128xf32>
      tpu.vector_store %arg11[%c0_31, %c0_32], %84 {strides = array<i32>} : memref<32x512xf32, #tpu.memory_space<vmem>>, vector<32x128xf32>,
      %c0_33 = arith.constant 0 : index
      %c384 = arith.constant 384 : index
      %86 = vector.load %arg11[%c0_33, %c384] : memref<32x512xf32, #tpu.memory_space<vmem>>, vector<32x128xf32>
      tpu.vector_store %arg11[%c0_33, %c384], %84 {strides = array<i32>} : memref<32x512xf32, #tpu.memory_space<vmem>>, vector<32x128xf32>,
      %c0_34 = arith.constant 0 : index
      %c0_35 = arith.constant 0 : index
      %c0_36 = arith.constant 0 : index
      %87 = vector.load %arg2[%c0_34, %c0_35, %c0_36] : memref<1x8x256xf32, #tpu.memory_space<vmem>>, vector<1x8x256xf32>
      %88 = vector.shape_cast %87 : vector<1x8x256xf32> to vector<8x256xf32>
      %c0_37 = arith.constant 0 : index
      %c0_38 = arith.constant 0 : index
      %89 = vector.load %arg10[%c0_37, %c0_38] : memref<9x256xf32, #tpu.memory_space<vmem>>, vector<8x256xf32>
      tpu.vector_store %arg10[%c0_37, %c0_38], %88 {strides = array<i32>} : memref<9x256xf32, #tpu.memory_space<vmem>>, vector<8x256xf32>,
      %cst_39 = arith.constant 1.000000e+00 : f32
      %90 = vector.broadcast %cst_39 : f32 to vector<1x256xf32>
      %c8 = arith.constant 8 : index
      %c0_40 = arith.constant 0 : index
      %91 = vector.load %arg10[%c8, %c0_40] : memref<9x256xf32, #tpu.memory_space<vmem>>, vector<1x256xf32>
      tpu.vector_store %arg10[%c8, %c0_40], %90 {strides = array<i32>} : memref<9x256xf32, #tpu.memory_space<vmem>>, vector<1x256xf32>,
    } else {
    }
    %c0 = arith.constant 0 : index
    %c0_1 = arith.constant 0 : index
    %3 = vector.load %arg10[%c0, %c0_1] : memref<9x256xf32, #tpu.memory_space<vmem>>, vector<9x256xf32>
    %c0_2 = arith.constant 0 : index
    %c0_3 = arith.constant 0 : index
    %c0_4 = arith.constant 0 : index
    %4 = vector.load %arg3[%c0_2, %c0_3, %c0_4] : memref<1x32x9xf32, #tpu.memory_space<vmem>>, vector<1x32x9xf32>
    %5 = vector.shape_cast %4 : vector<1x32x9xf32> to vector<32x9xf32>
    %cst = arith.constant dense<0.000000e+00> : vector<32x256xf32>
    %6 = tpu.matmul %5, %3, %cst {dimension_numbers = #tpu.dot_dimension_numbers<[1], [0], [0], [1], [0, 0, 1, 1], [], []>} : vector<32x9xf32>, vector<9x256xf32>, vector<32x256xf32> -> vector<32x256xf32>
    %cst_5 = arith.constant 3.000000e-01 : f32
    %7 = vector.broadcast %cst_5 : f32 to vector<32x256xf32>
    %8 = arith.mulf %7, %6 : vector<32x256xf32>
    %9 = arith.maximumf %6, %8 : vector<32x256xf32>
    %c0_6 = arith.constant 0 : index
    %c128 = arith.constant 128 : index
    %10 = vector.load %arg11[%c0_6, %c128] : memref<32x512xf32, #tpu.memory_space<vmem>>, vector<32x256xf32>
    tpu.vector_store %arg11[%c0_6, %c128], %9 {strides = array<i32>} : memref<32x512xf32, #tpu.memory_space<vmem>>, vector<32x256xf32>,
    %c0_7 = arith.constant 0 : index
    %c0_8 = arith.constant 0 : index
    %c0_9 = arith.constant 0 : index
    %11 = vector.load %arg4[%c0_7, %c0_8, %c0_9] : memref<1x32x9xf32, #tpu.memory_space<vmem>>, vector<1x32x9xf32>
    %12 = vector.shape_cast %11 : vector<1x32x9xf32> to vector<32x9xf32>
    %c0_10 = arith.constant 0 : index
    %c112 = arith.constant 112 : index
    %13 = vector.load %arg11[%c0_10, %c112] : memref<32x512xf32, #tpu.memory_space<vmem>>, vector<32x256xf32>
    %14 = vector.extract_strided_slice %12 {offsets = [0, 0], sizes = [32, 1], strides = [1, 1]} : vector<32x9xf32> to vector<32x1xf32>
    %15 = vector.broadcast %14 : vector<32x1xf32> to vector<32x256xf32>
    %16 = arith.mulf %13, %15 : vector<32x256xf32>
    %17 = vector.extract_strided_slice %12 {offsets = [0, 1], sizes = [32, 1], strides = [1, 1]} : vector<32x9xf32> to vector<32x1xf32>
    %18 = vector.broadcast %17 : vector<32x1xf32> to vector<32x256xf32>
    %19 = arith.mulf %13, %18 : vector<32x256xf32>
    %20 = vector.extract_strided_slice %12 {offsets = [0, 2], sizes = [32, 1], strides = [1, 1]} : vector<32x9xf32> to vector<32x1xf32>
    %21 = vector.broadcast %20 : vector<32x1xf32> to vector<32x256xf32>
    %22 = arith.mulf %13, %21 : vector<32x256xf32>
    %23 = vector.extract_strided_slice %12 {offsets = [0, 3], sizes = [32, 1], strides = [1, 1]} : vector<32x9xf32> to vector<32x1xf32>
    %24 = vector.broadcast %23 : vector<32x1xf32> to vector<32x256xf32>
    %25 = arith.mulf %9, %24 : vector<32x256xf32>
    %26 = vector.extract_strided_slice %12 {offsets = [0, 4], sizes = [32, 1], strides = [1, 1]} : vector<32x9xf32> to vector<32x1xf32>
    %27 = vector.broadcast %26 : vector<32x1xf32> to vector<32x256xf32>
    %28 = arith.mulf %9, %27 : vector<32x256xf32>
    %29 = vector.extract_strided_slice %12 {offsets = [0, 5], sizes = [32, 1], strides = [1, 1]} : vector<32x9xf32> to vector<32x1xf32>
    %30 = vector.broadcast %29 : vector<32x1xf32> to vector<32x256xf32>
    %31 = arith.mulf %9, %30 : vector<32x256xf32>
    %32 = arith.addf %16, %25 : vector<32x256xf32>
    %33 = arith.addf %19, %28 : vector<32x256xf32>
    %34 = arith.addf %22, %31 : vector<32x256xf32>
    %c0_11 = arith.constant 0 : index
    %c144 = arith.constant 144 : index
    %35 = vector.load %arg11[%c0_11, %c144] : memref<32x512xf32, #tpu.memory_space<vmem>>, vector<32x256xf32>
    %36 = vector.extract_strided_slice %12 {offsets = [0, 6], sizes = [32, 1], strides = [1, 1]} : vector<32x9xf32> to vector<32x1xf32>
    %37 = vector.broadcast %36 : vector<32x1xf32> to vector<32x256xf32>
    %38 = arith.mulf %35, %37 : vector<32x256xf32>
    %39 = vector.extract_strided_slice %12 {offsets = [0, 7], sizes = [32, 1], strides = [1, 1]} : vector<32x9xf32> to vector<32x1xf32>
    %40 = vector.broadcast %39 : vector<32x1xf32> to vector<32x256xf32>
    %41 = arith.mulf %35, %40 : vector<32x256xf32>
    %42 = vector.extract_strided_slice %12 {offsets = [0, 8], sizes = [32, 1], strides = [1, 1]} : vector<32x9xf32> to vector<32x1xf32>
    %43 = vector.broadcast %42 : vector<32x1xf32> to vector<32x256xf32>
    %44 = arith.mulf %35, %43 : vector<32x256xf32>
    %45 = arith.addf %32, %38 : vector<32x256xf32>
    %46 = arith.addf %33, %41 : vector<32x256xf32>
    %47 = arith.addf %34, %44 : vector<32x256xf32>
    %c0_12 = arith.constant 0 : index
    %c0_13 = arith.constant 0 : index
    %48 = vector.load %arg8[%c0_12, %c0_13] : memref<3x256xf32, #tpu.memory_space<vmem>>, vector<3x256xf32>
    %c1_i32 = arith.constant 1 : i32
    %49 = tpu.dynamic_rotate %45 by %c1_i32 dim 1 : vector<32x256xf32>, i32 -> vector<32x256xf32>
    %50 = vector.extract_strided_slice %48 {offsets = [0, 0], sizes = [1, 256], strides = [1, 1]} : vector<3x256xf32> to vector<1x256xf32>
    %51 = vector.broadcast %50 : vector<1x256xf32> to vector<32x256xf32>
    %52 = arith.mulf %49, %51 : vector<32x256xf32>
    %53 = arith.addf %52, %46 : vector<32x256xf32>
    %c255_i32 = arith.constant 255 : i32
    %54 = tpu.dynamic_rotate %47 by %c255_i32 dim 1 : vector<32x256xf32>, i32 -> vector<32x256xf32>
    %55 = vector.extract_strided_slice %48 {offsets = [2, 0], sizes = [1, 256], strides = [1, 1]} : vector<3x256xf32> to vector<1x256xf32>
    %56 = vector.broadcast %55 : vector<1x256xf32> to vector<32x256xf32>
    %57 = arith.mulf %54, %56 : vector<32x256xf32>
    %58 = arith.addf %53, %57 : vector<32x256xf32>
    %c0_14 = arith.constant 0 : index
    %c0_15 = arith.constant 0 : index
    %c0_16 = arith.constant 0 : index
    %59 = vector.load %arg6[%c0_14, %c0_15, %c0_16] : memref<1x32x1xf32, #tpu.memory_space<vmem>>, vector<1x32x1xf32>
    %60 = vector.shape_cast %59 : vector<1x32x1xf32> to vector<32x1xf32>
    %61 = vector.broadcast %60 : vector<32x1xf32> to vector<32x256xf32>
    %62 = arith.addf %58, %61 : vector<32x256xf32>
    %cst_17 = arith.constant 3.000000e-01 : f32
    %63 = vector.broadcast %cst_17 : f32 to vector<32x256xf32>
    %64 = arith.mulf %63, %62 : vector<32x256xf32>
    %65 = arith.maximumf %62, %64 : vector<32x256xf32>
    %c0_18 = arith.constant 0 : index
    %c0_19 = arith.constant 0 : index
    %c0_20 = arith.constant 0 : index
    %66 = vector.load %arg5[%c0_18, %c0_19, %c0_20] : memref<1x8x32xf32, #tpu.memory_space<vmem>>, vector<1x8x32xf32>
    %67 = vector.shape_cast %66 : vector<1x8x32xf32> to vector<8x32xf32>
    %cst_21 = arith.constant dense<0.000000e+00> : vector<8x256xf32>
    %68 = tpu.matmul %67, %65, %cst_21 {dimension_numbers = #tpu.dot_dimension_numbers<[1], [0], [0], [1], [0, 0, 1, 1], [], []>} : vector<8x32xf32>, vector<32x256xf32>, vector<8x256xf32> -> vector<8x256xf32>
    %c0_22 = arith.constant 0 : index
    %c0_23 = arith.constant 0 : index
    %c0_24 = arith.constant 0 : index
    %69 = vector.load %arg7[%c0_22, %c0_23, %c0_24] : memref<1x8x1xf32, #tpu.memory_space<vmem>>, vector<1x8x1xf32>
    %70 = vector.shape_cast %69 : vector<1x8x1xf32> to vector<8x1xf32>
    %71 = vector.broadcast %70 : vector<8x1xf32> to vector<8x256xf32>
    %72 = arith.addf %68, %71 : vector<8x256xf32>
    %cst_25 = arith.constant 3.000000e-01 : f32
    %73 = vector.broadcast %cst_25 : f32 to vector<8x256xf32>
    %74 = arith.mulf %73, %72 : vector<8x256xf32>
    %75 = arith.maximumf %72, %74 : vector<8x256xf32>
    %76 = vector.extract_strided_slice %3 {offsets = [0, 0], sizes = [8, 256], strides = [1, 1]} : vector<9x256xf32> to vector<8x256xf32>
    %77 = arith.addf %75, %76 : vector<8x256xf32>
    %c1_i32_26 = arith.constant 1 : i32
    %78 = arith.cmpi slt, %arg1, %c1_i32_26 : i32
    %79 = arith.extui %78 : i1 to i32
    %c0_i32_27 = arith.constant 0 : i32
    %80 = arith.cmpi ne, %79, %c0_i32_27 : i32
    scf.if %80 {
      %c0_30 = arith.constant 0 : index
      %c0_31 = arith.constant 0 : index
      %84 = vector.load %arg10[%c0_30, %c0_31] : memref<9x256xf32, #tpu.memory_space<vmem>>, vector<8x256xf32>
      tpu.vector_store %arg10[%c0_30, %c0_31], %77 {strides = array<i32>} : memref<9x256xf32, #tpu.memory_space<vmem>>, vector<8x256xf32>,
    } else {
    }
    %c1_i32_28 = arith.constant 1 : i32
    %81 = arith.cmpi eq, %arg1, %c1_i32_28 : i32
    %82 = arith.extui %81 : i1 to i32
    %c0_i32_29 = arith.constant 0 : i32
    %83 = arith.cmpi ne, %82, %c0_i32_29 : i32
    scf.if %83 {
      %c0_30 = arith.constant 0 : index
      %c0_31 = arith.constant 0 : index
      %c0_32 = arith.constant 0 : index
      %84 = vector.load %arg9[%c0_30, %c0_31, %c0_32] : memref<1x8x256xf32, #tpu.memory_space<vmem>>, vector<1x8x256xf32>
      %85 = vector.shape_cast %84 : vector<1x8x256xf32> to vector<8x256xf32>
      %86 = vector.shape_cast %77 : vector<8x256xf32> to vector<1x8x256xf32>
      tpu.vector_store %arg9[%c0_30, %c0_31, %c0_32], %86 {strides = array<i32>} : memref<1x8x256xf32, #tpu.memory_space<vmem>>, vector<1x8x256xf32>,
    } else {
    }
    return
  }
  func.func @transform_0(%arg0: i32, %arg1: i32) -> (i32, i32, i32) {
    %c0_i32 = arith.constant 0 : i32
    %c0_i32_0 = arith.constant 0 : i32
    %c0_i32_1 = arith.constant 0 : i32
    return %arg0, %c0_i32, %c0_i32_0 : i32, i32, i32
  }
  func.func @transform_1(%arg0: i32, %arg1: i32) -> (i32, i32, i32) {
    %c0_i32 = arith.constant 0 : i32
    %c0_i32_0 = arith.constant 0 : i32
    %c0_i32_1 = arith.constant 0 : i32
    return %arg1, %c0_i32, %c0_i32_0 : i32, i32, i32
  }
  func.func @transform_2(%arg0: i32, %arg1: i32) -> (i32, i32, i32) {
    %c0_i32 = arith.constant 0 : i32
    %c0_i32_0 = arith.constant 0 : i32
    %c0_i32_1 = arith.constant 0 : i32
    return %arg1, %c0_i32, %c0_i32_0 : i32, i32, i32
  }
  func.func @transform_3(%arg0: i32, %arg1: i32) -> (i32, i32, i32) {
    %c0_i32 = arith.constant 0 : i32
    %c0_i32_0 = arith.constant 0 : i32
    %c0_i32_1 = arith.constant 0 : i32
    return %arg1, %c0_i32, %c0_i32_0 : i32, i32, i32
  }
  func.func @transform_4(%arg0: i32, %arg1: i32) -> (i32, i32, i32) {
    %c0_i32 = arith.constant 0 : i32
    %c0_i32_0 = arith.constant 0 : i32
    %c0_i32_1 = arith.constant 0 : i32
    return %arg1, %c0_i32, %c0_i32_0 : i32, i32, i32
  }
  func.func @transform_5(%arg0: i32, %arg1: i32) -> (i32, i32, i32) {
    %c0_i32 = arith.constant 0 : i32
    %c0_i32_0 = arith.constant 0 : i32
    %c0_i32_1 = arith.constant 0 : i32
    return %arg1, %c0_i32, %c0_i32_0 : i32, i32, i32
  }
  func.func @transform_6(%arg0: i32, %arg1: i32) -> (i32, i32) {
    %c0_i32 = arith.constant 0 : i32
    %c0_i32_0 = arith.constant 0 : i32
    %c0_i32_1 = arith.constant 0 : i32
    return %c0_i32, %c0_i32_0 : i32, i32
  }
  func.func @transform_7(%arg0: i32, %arg1: i32) -> (i32, i32, i32) {
    %c0_i32 = arith.constant 0 : i32
    %c0_i32_0 = arith.constant 0 : i32
    %c0_i32_1 = arith.constant 0 : i32
    return %arg0, %c0_i32, %c0_i32_0 : i32, i32, i32
  }
}

</mosaic_0001>

<bundles_post_ra>
// kernel: tpu_custom_call.1
= control target key start
LH: loop header
LB: loop body
LE: loop exit
PB: predicated region body
PF: predicated region fallthrough
CT: control target
= control target key end

     0   :  { %s2822_s0 = inlined_call_operand.vmem [shape: f32[2,8,256], index: 0, kind: input, shape index: {}]   ;;  %s2823_s1 = inlined_call_operand.vmem [shape: f32[2,32,9], index: 1, kind: input, shape index: {}]   ;;  %s2824_s2 = inlined_call_operand.vmem [shape: f32[2,32,9], index: 2, kind: input, shape index: {}]   ;;  %s2825_s3 = inlined_call_operand.vmem [shape: f32[2,8,32], index: 3, kind: input, shape index: {}]   ;;  %s2826_s4 = inlined_call_operand.vmem [shape: f32[2,32,1], index: 4, kind: input, shape index: {}]   ;;  %s2827_s5 = inlined_call_operand.vmem [shape: f32[2,8,1], index: 5, kind: input, shape index: {}]   ;;  %s2828_s6 = inlined_call_operand.vmem [shape: f32[3,256], index: 6, kind: input, shape index: {}]   ;;  %s2829_s7 = inlined_call_operand.hbm [shape: f32[2,8,256], index: 7, kind: output, shape index: {}]  }
   0x1   :  { %2845 = sst [smem:[#allocation33_spill]] %s2822_s0 }
   0x2   :  { %12 = vsyncpa [#allocation5], 0 }
   0x3   :  { %14 = vsyncpa [#allocation5 + $0x1], 0  ;;  %s1981_s24 = smov 0   ;;  %s1983_s25 = smov 0  }
   0x4   :  { %s1985_s26 = smov 0   ;;  %s1987_s27 = smov 0  }
   0x5   :  { %s1989_s28 = smov 0   ;;  %s1991_s29 = smov 0  }
   0x6   :  { %s1993_s30 = smov 0   ;;  %s1995_s8 = smov 0  }
   0x7 LB: > { %2846 = sst [smem:[#allocation7_spill]] %s1895_s24  ;;  %s1669_s9 = sadd.s32 4294967295, %s1923_s8   ;;  %s1923_s8 = sphi %s1995_s8, %s20_s8   ;;  %s1919_s30 = sphi %s1993_s30, %s2901_s30   ;;  %s1915_s29 = sphi %s1991_s29, %s2900_s29   ;;  %s1911_s28 = sphi %s1989_s28, %s2899_s28   ;;  %s1907_s27 = sphi %s1987_s27, %s2898_s27   ;;  %s1903_s26 = sphi %s1985_s26, %s2897_s26   ;;  %s1899_s25 = sphi %s1983_s25, %s2903_s25   ;;  %s1895_s24 = sphi %s1981_s24, %s2902_s24  }
   0x8   : > { %2847 = sst [smem:[#allocation8_spill]] %s1903_s26  ;;  %s1670_s10 = sadd.s32 4294967294, %s1923_s8  }
   0x9   : > { %2848 = sst [smem:[#allocation9_spill]] %s1915_s29  ;;  %s29_s11 = sadd.s32 1, %s1915_s29 }
   0xa   : > { %2849 = sst [smem:[#allocation10_spill]] %s1919_s30  ;;  %p30_p0 = scmp.ge.s32.totalorder %s29_s11, 2 }
   0xb   : > { %s32_s12 = sadd.s32 1, %s1919_s30  ;;  %p226_p1 = scmp.ne.s32.totalorder %s1903_s26, %s1899_s25 }
   0xc   : > { %p227_p2 = scmp.eq.s32.totalorder %s1669_s9, 3  ;;  %s2905_s11 = smov (%p30_p0, %s29_s11), 0 }
   0xd   : > { %2850 = sst [smem:[#allocation11_spill]] %s2905_s11  ;;  %s2907_s12 = smov (!%p30_p0, %s32_s12), %s1919_s30 }
   0xe   : > { %p2030_p3 = por %p227_p2, %p226_p1  ;;  %p232_p4 = scmp.ne.s32.totalorder %s1899_s25, %s1895_s24 }
   0xf   : > { %p34_p5 = scmp.ge.s32.totalorder %s2907_s12, 2  ;;  %p233_p6 = scmp.eq.s32.totalorder %s1670_s10, 3 }
  0x10   : > { %p1673_p7 = scmp.ge.s32.totalorder %s1923_s8, 1  ;;  %p300_p8 = scmp.lt.s32.totalorder %s1923_s8, 5 }
  0x11   : > { %s2909_s12 = smov (%p34_p5, %s2907_s12), 0  ;;  %p2040_p9 = por %p233_p6, %p232_p4 }
  0x12   : > { %2852 = sst [smem:[#allocation12_spill]] %s2909_s12  ;;  %p301_p10 = pnand %p1673_p7, %p300_p8 }
  0x13   : > { %s2853_s14 = scalar_select %p2040_p9, 1, 0 }
  0x14   : > { %s213_s15 = ssub.s32 %s1919_s30, %s2909_s12  ;;  %s216_s16 = sadd.s32 1, %s1903_s26 }
  0x15   : > { %2854 = sst [smem:[#allocation13_spill]] %s2853_s14  ;;  %p214_p11 = scmp.eq.s32.totalorder %s213_s15, 0 }
  0x16   : > { %304 = sbr.rel (%p301_p10) target bundleno = 1021 (0x3fd), region = 48 }
  0x17   : > { %s2048_s17 = scalar_select %p214_p11, %s1903_s26, %s216_s16  }
  0x19   : > { %2855 = sst [smem:[#allocation14_spill]] %s2048_s17 }
  0x1b   : > { %s2833_s18 = sand.u32 1, %s1899_s25   ;;  %p355_p12 = scmp.lt.s32.totalorder %s1911_s28, 1 }
  0x1c   : > { %s1674_s19 = sshll.u32 %s2833_s18, 4  ;;  %p360_p13 = scmp.lt.s32.totalorder %s1907_s27, 1 }
  0x1d   : > { %s356_s20 = scalar_select %p355_p12, %s1911_s28, 1 }
  0x1e   : > { %s361_s21 = scalar_select %p360_p13, %s1907_s27, 1 }
  0x1f   : > { %s1705_s22 = sshll.u32 %s356_s20, 4  ;;  %s2856_s0 = sld [smem:[#allocation33_spill]] }
  0x20   : > { %s1706_s15 = sshll.u32 %s361_s21, 5  ;;  %s1681_s18 = sshll.u32 %s361_s21, 3 }
  0x21   : > { %s2063_s11 = scalar_lea.vmem %s2823_s1, %s1706_s15  ;;  %s2068_s17 = scalar_lea.vmem %s2824_s2, %s1706_s15 }
  0x22   : > { %s2073_s20 = scalar_lea.vmem %s2826_s4, %s1706_s15  ;;  %s2083_s16 = scalar_lea.vmem %s2827_s5, %s1681_s18 }
  0x23   : > { %p1685_p0 = scmp.ne.s32.totalorder %s1907_s27, 0 }
  0x25   : > { %s359_s10 = scalar_lea.vmem %s2856_s0, %s1705_s22  ;;  %s2078_s22 = scalar_lea.vmem %s2825_s3, %s1681_s18 }
  0x26   : > { %s2085_s0 = scalar_lea.vmem [#allocation4], %s1674_s19  ;;  %386 = sbr.rel (%p1685_p0) target bundleno = 55 (0x37), region = 52 }
  0x2b   : > { %v1925_v0 = vmov 0.0   ;;  %v399_v1 = vlaneseq  ;;  %v395_v2 = vld [vmem:[%s359_s10] sm:$0xff]  ;;  %v396_v3 = vld [vmem:[%s359_s10 + $0x8] sm:$0xff]  ;;  %v1926_v4 = vmov 1.0  }
  0x2c   : > { %387 = vst [vmem:[#allocation3 + $0x58] sm:$0xff] %v1925_v0 }
  0x2d   : > { %388 = vst [vmem:[#allocation3] sm:$0xff] %v1925_v0  ;;  %vm401_vm0 = vcmp.lt.s32.totalorder %v399_v1, 256 }
  0x2e   : > { %389 = vst [vmem:[#allocation3 + $0x30] sm:$0xff] %v1925_v0 }
  0x2f   : > { %390 = vst [vmem:[#allocation3 + $0x60] sm:$0xff] %v1925_v0 }
  0x30   : > { %391 = vst [vmem:[#allocation3 + $0x28] sm:$0xff] %v1925_v0 }
  0x31   : > { %392 = vst [vmem:[#allocation3 + $0x50] sm:$0xff] %v1925_v0 }
  0x32   : > { %393 = vst [vmem:[#allocation3 + $0x20] sm:$0xff] %v1925_v0 }
  0x33   : > { %394 = vst [vmem:[#allocation3 + $0x10] sm:$0xff] %v1925_v0 }
  0x34   : > { %397 = vst [vmem:[#allocation2] sm:$0xff] %v395_v2 }
  0x35   : > { %398 = vst [vmem:[#allocation2 + $0x8] sm:$0xff] %v396_v3 }
  0x36   : > { %404 = vst.msk [vmem:[#allocation2 + $0x10] ss:$8 sm:$0x3] %vm401_vm0, %v1926_v4 }
  0x37 PF: > { %vm427_vm1 = vcmask 1040384   ;;  %v1927_v6 = vmov 1   ;;  %v2089_v8 = vld [vmem:[%s2068_s17 + $0x10] sm:$0xff]  ;;  %v1928_v9 = vmov 0   ;;  %v2093_v10 = vld [vmem:[%s2068_s17] sm:$0xff]  ;;  %vm414_vm2 = vcmask 72704  }
  0x38   : > { %1803 = vset.pattern.permute.xlu0 %v1927_v6  ;;  %1802 = vset.pattern.permute.xlu2 %v1927_v6  ;;  %v410_v13 = vld [vmem:[%s2063_s11] sm:$0xff]  ;;  %v413_v14 = vld [vmem:[%s2063_s11 + $0x18] sm:$0xff]  ;;  %v2108_v16 = vld [vmem:[%s2068_s17 + $0x8] sm:$0xff]  ;;  %v1929_v17 = vmov 2   ;;  %v1930_v20 = vmov 4   ;;  %v1931_v21 = vmov 5  }
  0x39   : > { %1801 = vset.pattern.permute.xlu1 %v1928_v9  ;;  %573 = vperm.xlu0 %1803, %v2089_v8   ;;  %v2105_v15 = vld [vmem:[%s2068_s17 + $0x18] sm:$0xff]  ;;  %v411_v18 = vld [vmem:[%s2063_s11 + $0x8] sm:$0xff]  ;;  %v412_v19 = vld [vmem:[%s2063_s11 + $0x10] sm:$0xff]  ;;  %v1932_v22 = vmov 3   ;;  %v1933_v23 = vmov 6   ;;  %v1934_v24 = vmov 7  }
  0x3a   : > { %544 = vperm.xlu1 %1801, %v2089_v8   ;;  %565 = vperm.xlu2 %1802, %v2093_v10   ;;  %v2148_v28 = vld [vmem:[#allocation3 + $0x30] sm:$0xff]  ;;  %s1935_s24 = smov 112   ;;  %s1937_s26 = smov 96   ;;  %vm716_vm3 = vcmask 916480   ;;  %vm981_vm4 = vcmask 785408   ;;  %vm1187_vm5 = vcmask 130048  }
  0x3b   : > { %v406_v11 = vld [vmem:[#allocation2] sm:$0xff]  ;;  %s1938_s29 = smov 16   ;;  %s1939_s30 = smov 1   ;;  %vm1460_vm8 = vcmask 261120  }
  0x3c   : > { %v407_v12 = vld [vmem:[#allocation2 + $0x8] sm:$0xff]  ;;  %s1940_s11 = smov 127   ;;  %p1698_p1 = scmp.ge.s32.totalorder %s1907_s27, 1 }
  0x3d   : > { %v408_v5 = vld [vmem:[#allocation2 + $0x10] sm:$0x1]  ;;  %v409_v7 = vld [vmem:[#allocation2 + $0x18] sm:$0x1] }
  0x3e   : > { %1686 = vmatpush.msk.msra.mxu0 %vm427_vm1, %v408_v5  ;;  %1710 = vmatpush.msk.msra.mxu2 %vm427_vm1, %v408_v5 }
  0x3f   : > { %1691 = vmatpush.msk.msra.mxu1 %vm427_vm1, %v409_v7  ;;  %1712 = vmatpush.msk.msra.mxu3 %vm427_vm1, %v409_v7 }
  0x40   : > { %449 = vmatpush.msra.mxu0 %v406_v11  ;;  %1711 = vmatpush.msra.mxu2 %v406_v11 }
  0x41   : > { %478 = vmatpush.msra.mxu1 %v407_v12  ;;  %1713 = vmatpush.msra.mxu3 %v407_v12 }
  0x42   : > { %1687 = vmatmul.msk.f32.vlgmr.msra.gmra.mxu0 %vm414_vm2, %v410_v13  ;;  %1690 = vmatmul.msk.f32.vlgmr.msra.gmra.mxu2 %vm414_vm2, %v413_v14 }
  0x43   : > { %1692 = vmatmul.msk.f32.vlgmr.msra.gmra.mxu1 %vm414_vm2, %v410_v13  ;;  %1695 = vmatmul.msk.f32.vlgmr.msra.gmra.mxu3 %vm414_vm2, %v413_v14 }
  0x44   : > { %1807 = vset.pattern.permute.xlu0 %v1929_v17  ;;  %549 = vperm.xlu1 %1801, %v2105_v15  }
  0x45   : > { %569 = vperm.xlu2 %1802, %v2108_v16   ;;  %605 = vperm.xlu0 %1807, %v2105_v15  }
  0x4a   : > { %1688 = vmatmul.msk.f32.gmra.mxu0 %vm414_vm2, %v411_v18 }
  0x4b   : > { %1693 = vmatmul.msk.f32.gmra.mxu1 %vm414_vm2, %v411_v18 }
  0x4c   : > { %1804 = vset.pattern.permute.xlu1 %v1927_v6 }
  0x4d   : > { %1805 = vset.pattern.permute.xlu2 %v1929_v17  ;;  %1810 = vset.pattern.permute.xlu0 %v1930_v20 }
  0x4e   : > { %577 = vperm.xlu1 %1804, %v2105_v15   ;;  %593 = vperm.xlu2 %1805, %v2093_v10  }
  0x4f   : > { %645 = vperm.xlu0 %1810, %v2093_v10  }
  0x52   : > { %1689 = vmatmul.msk.f32.gmra.mxu0 %vm414_vm2, %v412_v19 }
  0x53   : > { %1694 = vmatmul.msk.f32.gmra.mxu1 %vm414_vm2, %v412_v19 }
  0x56   : > { %1806 = vset.pattern.permute.xlu1 %v1929_v17  ;;  %601 = vperm.xlu2 %1805, %v2089_v8  }
  0x57   : > { %597 = vperm.xlu1 %1806, %v2108_v16   ;;  %1814 = vset.pattern.permute.xlu0 %v1931_v21 }
  0x58   : > { %673 = vperm.xlu0 %1814, %v2108_v16  }
  0x5e   : > { %1809 = vset.pattern.permute.xlu2 %v1932_v22 }
  0x5f   : > { %1808 = vset.pattern.permute.xlu1 %v1932_v22  ;;  %625 = vperm.xlu2 %1809, %v2108_v16  }
  0x60   : > { %621 = vperm.xlu1 %1808, %v2093_v10   ;;  %1818 = vset.pattern.permute.xlu0 %v1933_v23 }
  0x61   : > { %870 = vperm.xlu0 %1818, %v2089_v8  }
  0x67   : > { %633 = vperm.xlu2 %1809, %v2105_v15  }
  0x68   : > { %629 = vperm.xlu1 %1808, %v2089_v8  }
  0x69   : > { %1821 = vset.pattern.permute.xlu0 %v1934_v24 }
  0x6f   : > { %1812 = vset.pattern.permute.xlu2 %v1930_v20 }
  0x70   : > { %1811 = vset.pattern.permute.xlu1 %v1930_v20  ;;  %653 = vperm.xlu2 %1812, %v2089_v8  }
  0x71   : > { %649 = vperm.xlu1 %1811, %v2108_v16  }
  0x78   : > { %1813 = vset.pattern.permute.xlu2 %v1931_v21 }
  0x79   : > { %657 = vperm.xlu1 %1811, %v2105_v15   ;;  %669 = vperm.xlu2 %1813, %v2093_v10  }
  0x81   : > { %1815 = vset.pattern.permute.xlu1 %v1931_v21  ;;  %681 = vperm.xlu2 %1813, %v2105_v15  }
  0x82   : > { %677 = vperm.xlu1 %1815, %v2089_v8  }
  0x89   : > { %1817 = vset.pattern.permute.xlu2 %v1933_v23 }
  0x8a   : > { %1816 = vset.pattern.permute.xlu1 %v1933_v23  ;;  %866 = vperm.xlu2 %1817, %v2108_v16   ;;  %v1936_v23 = vmov 8  }
  0x8b   : > { %862 = vperm.xlu1 %1816, %v2093_v10  }
  0x92   : > { %1819 = vset.pattern.permute.xlu2 %v1934_v24 }
  0x93   : > { %874 = vperm.xlu1 %1816, %v2105_v15   ;;  %890 = vperm.xlu2 %1819, %v2093_v10  }
  0x94   : > { %v2140_v25 = vpop.permute.xlu2 %565 }
  0x95   : > { %2857 = vst [vmem:[#allocation15_spill] sm:$0xff] %v2140_v25 }
  0x9b   : > { %1820 = vset.pattern.permute.xlu1 %v1934_v24  ;;  %898 = vperm.xlu2 %1819, %v2089_v8  }
  0x9c   : > { %894 = vperm.xlu1 %1820, %v2108_v16  }
  0x9f   : > { %v2144_v26 = vpop.permute.xlu2 %569 }
  0xa0   : > { %2858 = vst [vmem:[#allocation16_spill] sm:$0xff] %v2144_v26 }
  0xa3   : > { %1824 = vset.pattern.permute.xlu2 %v1936_v23 }
  0xa4   : > { %1823 = vset.pattern.permute.xlu1 %v1936_v23 }
  0xa8   : > { %v2146_v27 = vpop.permute.xlu2 %593 }
  0xab   : > { %v2150_v29 = vpop.permute.xlu0 %573 }
  0xac   : > { %v2152_v30 = vpop.permute.xlu1 %544  ;;  %v2156_v31 = vmul.f32 %v2150_v29, %v2148_v28 }
  0xb0   : > { %v2158_v32 = vpop.permute.xlu2 %601 }
  0xb6   : > { %v2160_v33 = vpop.permute.xlu1 %549 }
  0xb7   : > { %v2162_v34 = vpop.permute.xlu0 %605 }
  0xb9   : > { %v2164_v35 = vpop.permute.xlu2 %625 }
  0xbf   : > { %v451_v36 = vpop.f32.mrf.mxu0 }
  0xc0   : > { %v492_v37 = vmul.f32 0.3, %v451_v36  ;;  %v480_v38 = vpop.f32.mrf.mxu1  ;;  %v2168_v41 = vpop.permute.xlu1 %577 }
  0xc1   : > { %v493_v39 = vmul.f32 0.3, %v480_v38  ;;  %v646_v43 = vpop.permute.xlu0 %645  ;;  %v634_v45 = vpop.permute.xlu2 %633 }
  0xc2   : > { %v2166_v40 = vmax.f32 %v451_v36, %v492_v37 }
  0xc3   : > { %v2170_v42 = vmax.f32 %v480_v38, %v493_v39 }
  0xc4   : > { %v660_v44 = vmul.f32 %v646_v43, %v2166_v40 }
  0xc5   : > { %v460_v46 = vpop.f32.mrf.mxu2  ;;  %v661_v7 = vmul.f32 %v646_v43, %v2170_v42 }
  0xc6   : > { %v498_v47 = vmul.f32 0.3, %v460_v46  ;;  %v489_v48 = vpop.f32.mrf.mxu3  ;;  %753 = vrot.lane.b32.xlu0 %v660_v44, %s1935_s24 }
  0xc7   : > { %v499_v49 = vmul.f32 0.3, %v489_v48  ;;  %v454_v50 = vpop.f32.mrf.mxu0 }
  0xc8   : > { %v2174_v51 = vmax.f32 %v460_v46, %v498_v47  ;;  %v483_v52 = vpop.f32.mrf.mxu1  ;;  %v494_v53 = vmul.f32 0.3, %v454_v50 }
  0xc9   : > { %v2176_v54 = vmax.f32 %v489_v48, %v499_v49  ;;  %v495_v55 = vmul.f32 0.3, %v483_v52  ;;  %v2182_v58 = vpop.permute.xlu1 %597 }
  0xca   : > { %v2178_v56 = vmax.f32 %v454_v50, %v494_v53  ;;  %v654_v59 = vpop.permute.xlu2 %653  ;;  %v642_v13 = vmul.f32 %v634_v45, %v2174_v51  ;;  %v674_v38 = vpop.permute.xlu0 %673 }
  0xcb   : > { %v2180_v57 = vmax.f32 %v483_v52, %v495_v55  ;;  %v643_v14 = vmul.f32 %v634_v45, %v2176_v54  ;;  %v2241_v55 = vld [vmem:[#allocation3 + $0x28] sm:$0xff] }
  0xcc   : > { %v686_v43 = vmul.f32 %v674_v38, %v2178_v56  ;;  %v638_v44 = vmul.f32 %v2164_v35, %v2178_v56 }
  0xcd   : > { %v639_v37 = vmul.f32 %v2164_v35, %v2180_v57  ;;  %v687_v39 = vmul.f32 %v674_v38, %v2180_v57 }
  0xcf   : > { %v457_v60 = vpop.f32.mrf.mxu0 }
  0xd0   : > { %v496_v61 = vmul.f32 0.3, %v457_v60  ;;  %v486_v62 = vpop.f32.mrf.mxu1 }
  0xd1   : > { %v497_v63 = vmul.f32 0.3, %v486_v62 }
  0xd2   : > { %v2184_v0 = vmax.f32 %v457_v60, %v496_v61  ;;  %v622_v2 = vpop.permute.xlu1 %621 }
  0xd3   : > { %v2186_v1 = vmax.f32 %v486_v62, %v497_v63  ;;  %v636_v3 = vmul.f32 %v622_v2, %v2166_v40  ;;  %v637_v4 = vmul.f32 %v622_v2, %v2170_v42  ;;  %v670_v5 = vpop.permute.xlu2 %669 }
  0xd4   : > { %v685_v6 = vmul.f32 %v670_v5, %v2170_v42  ;;  %v684_v12 = vmul.f32 %v670_v5, %v2166_v40  ;;  %v664_v47 = vmul.f32 %v654_v59, %v2184_v0 }
  0xd5   : > { %702 = vrot.lane.b32.xlu2 %v637_v4, %s1935_s24  ;;  %700 = vrot.lane.b32.xlu1 %v636_v3, %s1935_s24  ;;  %v665_v35 = vmul.f32 %v654_v59, %v2186_v1  ;;  %v871_v4 = vpop.permute.xlu0 %870 }
  0xd6   : > { %807 = vrot.lane.b32.xlu0 %v685_v6, %s1935_s24  ;;  %v883_v5 = vmul.f32 %v871_v4, %v2184_v0 }
  0xda   : > { %v630_v11 = vpop.permute.xlu1 %629 }
  0xdb   : > { %v682_v18 = vpop.permute.xlu2 %681  ;;  %v640_v45 = vmul.f32 %v630_v11, %v2184_v0  ;;  %v641_v49 = vmul.f32 %v630_v11, %v2186_v1 }
  0xdc   : > { %v690_v19 = vmul.f32 %v682_v18, %v2174_v51  ;;  %v691_v36 = vmul.f32 %v682_v18, %v2176_v54  ;;  %v2288_v18 = vld [vmem:[#allocation3 + $0x60] sm:$0xff] }
  0xdd   : > { %805 = vrot.lane.b32.xlu2 %v684_v12, %s1935_s24  ;;  %755 = vrot.lane.b32.xlu1 %v661_v7, %s1935_s24  ;;  %v2272_v7 = vld [vmem:[#allocation3 + $0x20] sm:$0xff] }
  0xe3   : > { %v650_v17 = vpop.permute.xlu1 %649 }
  0xe4   : > { %v662_v24 = vmul.f32 %v650_v17, %v2178_v56  ;;  %v663_v46 = vmul.f32 %v650_v17, %v2180_v57  ;;  %v2235_v53 = vpop.permute.xlu2 %866 }
  0xe5   : > { %714 = vrot.lane.b32.xlu2 %v643_v14, %s1935_s24  ;;  %712 = vrot.lane.b32.xlu1 %v642_v13, %s1935_s24  ;;  %v881_v2 = vmul.f32 %v2235_v53, %v2180_v57  ;;  %v880_v12 = vmul.f32 %v2235_v53, %v2178_v56 }
  0xeb   : > { %v658_v20 = vpop.permute.xlu1 %657 }
  0xec   : > { %v666_v21 = vmul.f32 %v658_v20, %v2174_v51  ;;  %v667_v22 = vmul.f32 %v658_v20, %v2176_v54  ;;  %v617_v20 = vmul.f32 %v2162_v34, %v2288_v18 }
  0xed   : > { %817 = vrot.lane.b32.xlu2 %v690_v19, %s1935_s24  ;;  %v2245_v60 = vpop.permute.xlu2 %890 }
  0xee   : > { %765 = vrot.lane.b32.xlu0 %v666_v21, %s1935_s24  ;;  %767 = vrot.lane.b32.xlu1 %v667_v22, %s1935_s24 }
  0xf4   : > { %v678_v48 = vpop.permute.xlu1 %677 }
  0xf5   : > { %757 = vrot.lane.b32.xlu2 %v662_v24, %s1935_s24  ;;  %v689_v50 = vmul.f32 %v678_v48, %v2186_v1  ;;  %v688_v52 = vmul.f32 %v678_v48, %v2184_v0  ;;  %v589_v48 = vmul.f32 %v2168_v41, %v2288_v18 }
  0xf6   : > { %819 = vrot.lane.b32.xlu0 %v691_v36, %s1935_s24  ;;  %706 = vrot.lane.b32.xlu1 %v639_v37, %s1935_s24  ;;  %v884_v37 = vmul.f32 %v871_v4, %v2186_v1 }
  0xfd   : > { %811 = vrot.lane.b32.xlu2 %v687_v39, %s1935_s24  ;;  %v863_v59 = vpop.permute.xlu1 %862 }
  0xfe   : > { %809 = vrot.lane.b32.xlu1 %v686_v43, %s1935_s24  ;;  %704 = vrot.lane.b32.xlu0 %v638_v44, %s1935_s24  ;;  %v879_v61 = vmul.f32 %v863_v59, %v2241_v55  ;;  %v878_v62 = vmul.f32 %v863_v59, %v2170_v42  ;;  %v877_v6 = vmul.f32 %v863_v59, %v2166_v40 }
  0xff   : > { %v588_v59 = vmul.f32 %v2150_v29, %v2186_v1 }
 0x105   : > { %708 = vrot.lane.b32.xlu2 %v640_v45, %s1935_s24 }
 0x106   : > { %759 = vrot.lane.b32.xlu0 %v663_v46, %s1935_s24  ;;  %761 = vrot.lane.b32.xlu1 %v664_v47, %s1935_s24 }
 0x10d   : > { %763 = vrot.lane.b32.xlu2 %v665_v35, %s1935_s24 }
 0x10e   : > { %710 = vrot.lane.b32.xlu0 %v641_v49, %s1935_s24  ;;  %815 = vrot.lane.b32.xlu1 %v689_v50, %s1935_s24 }
 0x115   : > { %926 = vperm.xlu2 %1824, %v2089_v8   ;;  %v2252_v8 = vpop.permute.xlu2 %898 }
 0x116   : > { %813 = vrot.lane.b32.xlu0 %v688_v52, %s1935_s24  ;;  %930 = vperm.xlu1 %1823, %v2105_v15  }
 0x11d   : > { %918 = vperm.xlu2 %1824, %v2093_v10  }
 0x11e   : > { %902 = vperm.xlu0 %1821, %v2105_v15   ;;  %922 = vperm.xlu1 %1823, %v2108_v16   ;;  %v875_v15 = vpop.permute.xlu1 %874 }
 0x11f   : > { %v886_v63 = vmul.f32 %v875_v15, %v2174_v51  ;;  %v887_v19 = vmul.f32 %v875_v15, %v2176_v54 }
 0x125   : > { %961 = vrot.lane.b32.xlu2 %v879_v61, %s1937_s26 }
 0x126   : > { %1822 = vset.pattern.permute.xlu0 %v1928_v9  ;;  %959 = vrot.lane.b32.xlu1 %v878_v62, %s1937_s26  ;;  %v2281_v13 = vpop.permute.xlu1 %894  ;;  %v619_v62 = vmul.f32 %v2162_v34, %v2176_v54 }
 0x127   : > { %534 = vperm.xlu0 %1822, %v2093_v10   ;;  %1825 = vset.pattern.permute.xlu2 %v1928_v9  ;;  %v2265_v10 = vld [vmem:[#allocation3 + $0x10] sm:$0xff] }
 0x128   : > { %1826 = vset.pattern.permute.xlu1 %v1928_v9  ;;  %v888_v9 = vmul.f32 %v875_v15, %v2265_v10 }
 0x12d   : > { %975 = vrot.lane.b32.xlu2 %v886_v63, %s1937_s26  ;;  %v618_v63 = vmul.f32 %v2162_v34, %v2174_v51 }
 0x12e   : > { %965 = vrot.lane.b32.xlu1 %v881_v2, %s1937_s26 }
 0x12f   : > { %v2262_v3 = vpop.permute.xlu2 %702  ;;  %539 = vperm.xlu0 %1822, %v2108_v16   ;;  %v885_v16 = vmul.f32 %v871_v4, %v2272_v7 }
 0x135   : > { %969 = vrot.lane.b32.xlu2 %v883_v5, %s1937_s26 }
 0x136   : > { %979 = vrot.lane.b32.xlu1 %v888_v9, %s1937_s26 }
 0x137   : > { %v2274_v11 = vpop.permute.xlu2 %805  ;;  %957 = vrot.lane.b32.xlu0 %v877_v6, %s1937_s26 }
 0x138   : > { %v2286_v17 = vpop.permute.xlu0 %753 }
 0x139   : > { %2859 = vst [vmem:[#allocation17_spill] sm:$0xff] %v2286_v17 }
 0x13e   : > { %973 = vrot.lane.b32.xlu1 %v885_v16, %s1937_s26 }
 0x13f   : > { %v2283_v14 = vpop.permute.xlu2 %714  ;;  %963 = vrot.lane.b32.xlu0 %v880_v12, %s1937_s26 }
 0x147   : > { %v818_v21 = vpop.permute.xlu2 %817  ;;  %v2293_v22 = vpop.permute.xlu1 %700  ;;  %977 = vrot.lane.b32.xlu0 %v887_v19, %s1937_s26 }
 0x148   : > { %v2296_v23 = vadd.f32 %v818_v21, %v617_v20  ;;  %v2298_v24 = vpop.permute.xlu0 %807 }
 0x149   : > { %2860 = vst [vmem:[#allocation18_spill] sm:$0xff] %v2298_v24  ;;  %v2303_v36 = vsel %vm716_vm3, %v2274_v11, %v2298_v24 }
 0x14a   : > { %2861 = vst [vmem:[#allocation19_spill] sm:$0xff] %v2303_v36 }
 0x14f   : > { %v2306_v38 = vpop.permute.xlu1 %755  ;;  %v2308_v39 = vpop.permute.xlu2 %757  ;;  %971 = vrot.lane.b32.xlu0 %v884_v37, %s1937_s26 }
 0x150   : > { %2862 = vst [vmem:[#allocation20_spill] sm:$0xff] %v2306_v38  ;;  %v2314_v43 = vsel %vm716_vm3, %v2286_v17, %v2306_v38  ;;  %v2398_v17 = vld [vmem:[#allocation3 + $0x50] sm:$0xff] }
 0x151   : > { %2863 = vst [vmem:[#allocation21_spill] sm:$0xff] %v2308_v39 }
 0x152   : > { %2864 = vst [vmem:[#allocation22_spill] sm:$0xff] %v2314_v43 }
 0x157   : > { %v2316_v44 = vpop.permute.xlu1 %712  ;;  %v2318_v45 = vpop.permute.xlu2 %811 }
 0x158   : > { %2865 = vst [vmem:[#allocation23_spill] sm:$0xff] %v2318_v45  ;;  %v2323_v46 = vsel %vm716_vm3, %v2316_v44, %v2283_v14 }
 0x15f   : > { %v2325_v47 = vpop.permute.xlu2 %708 }
 0x160   : > { %v766_v35 = vpop.permute.xlu0 %765  ;;  %v2329_v49 = vpop.permute.xlu1 %767 }
 0x161   : > { %v2331_v50 = vadd.f32 %v766_v35, %v589_v48  ;;  %v2335_v52 = vsel %vm716_vm3, %v766_v35, %v2329_v49 }
 0x162   : > { %2867 = vst [vmem:[#allocation25_spill] sm:$0xff] %v2335_v52 }
 0x163   : > { %2866 = vst [vmem:[#allocation24_spill] sm:$0xff] %v2331_v50 }
 0x167   : > { %v764_v61 = vpop.permute.xlu2 %763 }
 0x168   : > { %v2341_v15 = vadd.f32 %v764_v61, %v588_v59  ;;  %v820_v2 = vpop.permute.xlu0 %819  ;;  %v2345_v4 = vpop.permute.xlu1 %706 }
 0x169   : > { %v824_v5 = vsel %vm716_vm3, %v818_v21, %v820_v2  ;;  %v2348_v9 = vadd.f32 %v820_v2, %v619_v62  ;;  %v587_v21 = vmul.f32 %v2150_v29, %v2184_v0 }
 0x16a   : > { %2868 = vst [vmem:[#allocation26_spill] sm:$0xff] %v2341_v15  ;;  %v2350_v6 = vadd.f32 %v824_v5, %v618_v63 }
 0x16f   : > { %v927_v5 = vpop.permute.xlu2 %926 }
 0x170   : > { %v2352_v16 = vpop.permute.xlu1 %809  ;;  %v705_v12 = vpop.permute.xlu0 %704  ;;  %v940_v26 = vmul.f32 %v927_v5, %v2186_v1 }
 0x171   : > { %v2357_v19 = vsel %vm716_vm3, %v2352_v16, %v2318_v45  ;;  %v718_v34 = vsel %vm716_vm3, %v705_v12, %v2345_v4 }
 0x172   : > { %2869 = vst [vmem:[#allocation27_spill] sm:$0xff] %v2357_v19 }
 0x178   : > { %v2361_v20 = vpop.permute.xlu0 %759  ;;  %v762_v37 = vpop.permute.xlu1 %761 }
 0x179   : > { %2870 = vst [vmem:[#allocation28_spill] sm:$0xff] %v2361_v20  ;;  %v2368_v48 = vsel %vm716_vm3, %v2308_v39, %v2361_v20  ;;  %v771_v35 = vsel %vm716_vm3, %v762_v37, %v764_v61  ;;  %v2372_v59 = vadd.f32 %v762_v37, %v2156_v31  ;;  %v939_v39 = vmul.f32 %v927_v5, %v2184_v0 }
 0x17a   : > { %2871 = vst [vmem:[#allocation29_spill] sm:$0xff] %v2368_v48  ;;  %v2374_v62 = vadd.f32 %v771_v35, %v587_v21  ;;  %v919_v35 = vpop.permute.xlu2 %918  ;;  %v882_v48 = vmul.f32 %v2235_v53, %v2398_v17 }
 0x17b   : > { %2872 = vst [vmem:[#allocation30_spill] sm:$0xff] %v2372_v59  ;;  %v934_v24 = vmul.f32 %v919_v35, %v2170_v42  ;;  %v935_v45 = vmul.f32 %v919_v35, %v2241_v55 }
 0x17c   : > { %2873 = vst [vmem:[#allocation31_spill] sm:$0xff] %v2374_v62 }
 0x180   : > { %v2376_v63 = vpop.permute.xlu0 %710  ;;  %v2378_v2 = vpop.permute.xlu1 %815 }
 0x181   : > { %v2383_v29 = vsel %vm716_vm3, %v2325_v47, %v2376_v63 }
 0x188   : > { %v2385_v38 = vpop.permute.xlu0 %813  ;;  %v931_v43 = vpop.permute.xlu1 %930 }
 0x189   : > { %v2390_v31 = vsel %vm716_vm3, %v2385_v38, %v2378_v2  ;;  %v942_v61 = vmul.f32 %v931_v43, %v2174_v51  ;;  %v943_v37 = vmul.f32 %v931_v43, %v2176_v54  ;;  %v944_v21 = vmul.f32 %v931_v43, %v2265_v10 }
 0x18a   : > { %v941_v43 = vmul.f32 %v927_v5, %v2272_v7  ;;  %v933_v5 = vmul.f32 %v919_v35, %v2166_v40  ;;  %v912_v35 = vmul.f32 %v2252_v8, %v2186_v1 }
 0x18b   : > { %1114 = vrot.lane.b32.xlu0 %v943_v37, %s1937_s26  ;;  %1112 = vrot.lane.b32.xlu2 %v942_v61, %s1937_s26  ;;  %v962_v61 = vpop.permute.xlu2 %961 }
 0x18c   : > { %1116 = vrot.lane.b32.xlu1 %v944_v21, %s1937_s26 }
 0x190   : > { %v903_v25 = vpop.permute.xlu0 %902  ;;  %v923_v20 = vpop.permute.xlu1 %922 }
 0x191   : > { %v936_v21 = vmul.f32 %v923_v20, %v2178_v56  ;;  %v937_v15 = vmul.f32 %v923_v20, %v2180_v57 }
 0x193   : > { %1106 = vrot.lane.b32.xlu0 %v939_v39, %s1937_s26  ;;  %967 = vrot.lane.b32.xlu2 %v882_v48, %s1937_s26  ;;  %v2418_v48 = vld [vmem:[#allocation3] sm:$0xff] }
 0x194   : > { %1108 = vrot.lane.b32.xlu1 %v940_v26, %s1937_s26 }
 0x198   : > { %v960_v37 = vpop.permute.xlu1 %959 }
 0x199   : > { %v983_v59 = vsel %vm981_vm4, %v960_v37, %v962_v61  ;;  %v535_v53 = vpop.permute.xlu0 %534  ;;  %v938_v61 = vmul.f32 %v923_v20, %v2398_v17 }
 0x19a   : > { %v554_v50 = vmul.f32 %v535_v53, %v2170_v42  ;;  %v553_v62 = vmul.f32 %v535_v53, %v2166_v40 }
 0x19b   : > { %1100 = vrot.lane.b32.xlu0 %v936_v21, %s1937_s26  ;;  %1110 = vrot.lane.b32.xlu2 %v941_v43, %s1937_s26 }
 0x19c   : > { %v735_v26 = vadd.f32 %v2262_v3, %v554_v50  ;;  %1102 = vrot.lane.b32.xlu1 %v937_v15, %s1937_s26  ;;  %v2426_v50 = vld [vmem:[#allocation3 + $0x58] sm:$0xff] }
 0x19d   : > { %v552_v15 = vmul.f32 %v535_v53, %v2426_v50 }
 0x19e   : > { %v2416_v39 = vadd.f32 %v983_v59, %v735_v26 }
 0x1a0   : > { %2874 = vst [vmem:[#allocation32_spill] sm:$0xff] %v2416_v39 }
 0x1a1   : > { %v540_v52 = vpop.permute.xlu0 %539 }
 0x1a2   : > { %v555_v36 = vmul.f32 %v540_v52, %v2418_v48  ;;  %v556_v21 = vmul.f32 %v540_v52, %v2178_v56  ;;  %v557_v43 = vmul.f32 %v540_v52, %v2180_v57  ;;  %v717_v52 = vsel %vm716_vm3, %v2293_v22, %v2262_v3 }
 0x1a3   : > { %1094 = vrot.lane.b32.xlu0 %v933_v5, %s1937_s26  ;;  %1104 = vrot.lane.b32.xlu2 %v938_v61, %s1937_s26  ;;  %v733_v5 = vadd.f32 %v2293_v22, %v552_v15  ;;  %v914_v61 = vmul.f32 %v903_v25, %v2174_v51  ;;  %v734_v19 = vadd.f32 %v717_v52, %v553_v62 }
 0x1a4   : > { %1096 = vrot.lane.b32.xlu1 %v934_v24, %s1937_s26  ;;  %v736_v20 = vadd.f32 %v705_v12, %v555_v36  ;;  %v737_v59 = vadd.f32 %v718_v34, %v556_v21  ;;  %v2433_v26 = vadd.f32 %v2345_v4, %v557_v43  ;;  %v915_v24 = vmul.f32 %v903_v25, %v2176_v54  ;;  %v2454_v34 = vpop.permute.xlu1 %965 }
 0x1a5   : > { %v916_v3 = vmul.f32 %v903_v25, %v2265_v10  ;;  %v911_v22 = vmul.f32 %v2252_v8, %v2184_v0  ;;  %v561_v25 = vmul.f32 %v2160_v33, %v2288_v18  ;;  %v976_v10 = vpop.permute.xlu2 %975  ;;  %v913_v21 = vmul.f32 %v2252_v8, %v2272_v7 }
 0x1a6   : > { %v563_v18 = vmul.f32 %v2160_v33, %v2176_v54 }
 0x1a8   : > { %v744_v7 = vadd.f32 %v2283_v14, %v563_v18  ;;  %v908_v14 = vmul.f32 %v2281_v13, %v2178_v56 }
 0x1a9   : > { %v958_v39 = vpop.permute.xlu0 %957 }
 0x1aa   : > { %v982_v36 = vsel %vm981_vm4, %v958_v39, %v960_v37  ;;  %v2444_v4 = vadd.f32 %v958_v39, %v733_v5  ;;  %v742_v39 = vadd.f32 %v2316_v44, %v561_v25 }
 0x1ab   : > { %v2446_v12 = vadd.f32 %v982_v36, %v734_v19  ;;  %1044 = vrot.lane.b32.xlu0 %v914_v61, %s1937_s26  ;;  %1098 = vrot.lane.b32.xlu2 %v935_v45, %s1937_s26  ;;  %v562_v45 = vmul.f32 %v2160_v33, %v2174_v51  ;;  %v558_v36 = vmul.f32 %v2152_v30, %v2148_v28 }
 0x1ac   : > { %1046 = vrot.lane.b32.xlu1 %v915_v24, %s1937_s26  ;;  %v1011_v15 = vadd.f32 %v976_v10, %v742_v39  ;;  %v980_v5 = vpop.permute.xlu1 %979 }
 0x1ad   : > { %v743_v43 = vadd.f32 %v2323_v46, %v562_v45  ;;  %v970_v46 = vpop.permute.xlu2 %969  ;;  %v739_v33 = vadd.f32 %v2325_v47, %v558_v36 }
 0x1b1   : > { %v964_v62 = vpop.permute.xlu0 %963 }
 0x1b2   : > { %v984_v19 = vsel %vm981_vm4, %v964_v62, %v2454_v34  ;;  %v1005_v37 = vadd.f32 %v964_v62, %v736_v20 }
 0x1b3   : > { %v2460_v53 = vadd.f32 %v984_v19, %v737_v59  ;;  %1038 = vrot.lane.b32.xlu0 %v911_v22, %s1937_s26  ;;  %1048 = vrot.lane.b32.xlu2 %v916_v3, %s1937_s26  ;;  %v1008_v3 = vadd.f32 %v970_v46, %v739_v33 }
 0x1b4   : > { %1040 = vrot.lane.b32.xlu1 %v912_v35, %s1937_s26  ;;  %v974_v35 = vpop.permute.xlu1 %973 }
 0x1b9   : > { %v978_v20 = vpop.permute.xlu0 %977 }
 0x1ba   : > { %v988_v59 = vsel %vm981_vm4, %v976_v10, %v978_v20  ;;  %v989_v8 = vsel %vm981_vm4, %v978_v20, %v980_v5 }
 0x1bb   : > { %v1012_v52 = vadd.f32 %v988_v59, %v743_v43  ;;  %1181 = vrot.lane.b32.xlu0 %v1011_v15, %s1938_s29  ;;  %1042 = vrot.lane.b32.xlu2 %v913_v21, %s1937_s26  ;;  %v1013_v44 = vadd.f32 %v989_v8, %v744_v7  ;;  %v614_v21 = vmul.f32 %v2158_v32, %v2148_v28 }
 0x1bc   : > { %v559_v43 = vmul.f32 %v2152_v30, %v2184_v0  ;;  %v560_v15 = vmul.f32 %v2152_v30, %v2186_v1  ;;  %v905_v30 = vmul.f32 %v2245_v60, %v2166_v40 }
 0x1bd   : > { %1183 = vrot.lane.b32.xlu1 %v1012_v52, %s1938_s29 }
 0x1be   : > { %v741_v52 = vadd.f32 %v2376_v63, %v560_v15  ;;  %v910_v63 = vmul.f32 %v2281_v13, %v2398_v17  ;;  %v615_v17 = vmul.f32 %v2158_v32, %v2184_v0 }
 0x1c1   : > { %v972_v62 = vpop.permute.xlu0 %971 }
 0x1c2   : > { %v986_v20 = vsel %vm981_vm4, %v970_v46, %v972_v62 }
 0x1c3   : > { %1185 = vrot.lane.b32.xlu2 %v1013_v44, %s1938_s29 }
 0x1e5   : > { %v1113_v61 = vpop.permute.xlu2 %1112 }
 0x1e6   : > { %v1147_v24 = vadd.f32 %v1113_v61, %v2296_v23 }
 0x1e8   : > { %1336 = vrot.lane.b32.xlu0 %v1147_v24, %s1938_s29 }
 0x1ed   : > { %v968_v22 = vpop.permute.xlu2 %967 }
 0x1f0   : > { %1175 = vrot.lane.b32.xlu0 %v1008_v3, %s1938_s29 }
 0x1f5   : > { %v1111_v19 = vpop.permute.xlu2 %1110 }
 0x1f8   : > { %1032 = vrot.lane.b32.xlu0 %v908_v14, %s1937_s26 }
 0x1fd   : > { %v1115_v23 = vpop.permute.xlu0 %1114  ;;  %v2509_v8 = vpop.permute.xlu2 %1104 }
 0x1fe   : > { %v1124_v25 = vsel %vm981_vm4, %v1113_v61, %v1115_v23  ;;  %v1117_v10 = vpop.permute.xlu1 %1116  ;;  %v985_v61 = vsel %vm981_vm4, %v2454_v34, %v968_v22  ;;  %v844_v22 = vadd.f32 %v2390_v31, %v615_v17 }
 0x1ff   : > { %v1148_v45 = vadd.f32 %v1124_v25, %v2350_v6  ;;  %v1125_v47 = vsel %vm981_vm4, %v1115_v23, %v1117_v10  ;;  %v843_v6 = vadd.f32 %v2385_v38, %v614_v21  ;;  %v1007_v36 = vadd.f32 %v985_v61, %v2433_v26 }
 0x200   : > { %v1149_v39 = vadd.f32 %v1125_v47, %v2348_v9  ;;  %1169 = vrot.lane.b32.xlu0 %v1005_v37, %s1938_s29  ;;  %v740_v9 = vadd.f32 %v2383_v29, %v559_v43  ;;  %v987_v37 = vsel %vm981_vm4, %v972_v62, %v974_v35  ;;  %v909_v29 = vmul.f32 %v2281_v13, %v2180_v57 }
 0x201   : > { %1338 = vrot.lane.b32.xlu1 %v1148_v45, %s1938_s29  ;;  %v1010_v7 = vadd.f32 %v987_v37, %v741_v52  ;;  %v611_v13 = vmul.f32 %v2182_v58, %v2418_v48  ;;  %v616_v26 = vmul.f32 %v2158_v32, %v2186_v1  ;;  %v608_v32 = vmul.f32 %v2146_v27, %v2426_v50  ;;  %v2877_v52 = vld [vmem:[#allocation23_spill] sm:$0xff] }
 0x202   : > { %1340 = vrot.lane.b32.xlu2 %v1149_v39, %s1938_s29  ;;  %v1009_v5 = vadd.f32 %v986_v20, %v740_v9  ;;  %v907_v10 = vmul.f32 %v2245_v60, %v2241_v55  ;;  %v591_v45 = vmul.f32 %v2168_v41, %v2176_v54  ;;  %v2875_v54 = vld [vmem:[#allocation32_spill] sm:$0xff]  ;;  %v2876_v9 = vld [vmem:[#allocation27_spill] sm:$0xff] }
 0x203   : > { %v840_v34 = vadd.f32 %v2352_v16, %v611_v13  ;;  %v845_v62 = vadd.f32 %v2378_v2, %v616_v26  ;;  %v837_v0 = vadd.f32 %v2274_v11, %v608_v32  ;;  %v906_v2 = vmul.f32 %v2245_v60, %v2170_v42  ;;  %v2882_v26 = vld [vmem:[#allocation24_spill] sm:$0xff]  ;;  %v2886_v32 = vld [vmem:[#allocation21_spill] sm:$0xff] }
 0x204   : > { %v796_v47 = vadd.f32 %v2329_v49, %v591_v45  ;;  %v612_v60 = vmul.f32 %v2182_v58, %v2178_v56 }
 0x205   : > { %v1107_v59 = vpop.permute.xlu0 %1106  ;;  %v2521_v44 = vpop.permute.xlu2 %1098 }
 0x206   : > { %v1109_v28 = vpop.permute.xlu1 %1108  ;;  %v1144_v18 = vadd.f32 %v1107_v59, %v843_v6  ;;  %v613_v6 = vmul.f32 %v2182_v58, %v2180_v57  ;;  %v841_v37 = vadd.f32 %v2876_v9, %v612_v60  ;;  %v609_v58 = vmul.f32 %v2146_v27, %v2166_v40 }
 0x207   : > { %v1122_v3 = vsel %vm981_vm4, %v1107_v59, %v1109_v28 }
 0x208   : > { %1330 = vrot.lane.b32.xlu0 %v1144_v18, %s1938_s29  ;;  %v1145_v23 = vadd.f32 %v1122_v3, %v844_v22 }
 0x209   : > { %1177 = vrot.lane.b32.xlu1 %v1009_v5, %s1938_s29 }
 0x20a   : > { %1179 = vrot.lane.b32.xlu2 %v1010_v7, %s1938_s29 }
 0x20d   : > { %v1101_v46 = vpop.permute.xlu0 %1100  ;;  %v1049_v33 = vpop.permute.xlu2 %1048 }
 0x20e   : > { %v1103_v38 = vpop.permute.xlu1 %1102  ;;  %v1141_v14 = vadd.f32 %v1101_v46, %v840_v34 }
 0x20f   : > { %v1120_v20 = vsel %vm981_vm4, %v1101_v46, %v1103_v38  ;;  %v1121_v59 = vsel %vm981_vm4, %v1103_v38, %v2509_v8  ;;  %v2879_v38 = vld [vmem:[#allocation19_spill] sm:$0xff]  ;;  %v2880_v46 = vld [vmem:[#allocation18_spill] sm:$0xff] }
 0x210   : > { %1026 = vrot.lane.b32.xlu0 %v905_v30, %s1937_s26  ;;  %v1142_v5 = vadd.f32 %v1120_v20, %v841_v37  ;;  %v610_v30 = vmul.f32 %v2146_v27, %v2170_v42  ;;  %v590_v27 = vmul.f32 %v2168_v41, %v2174_v51 }
 0x211   : > { %1034 = vrot.lane.b32.xlu1 %v909_v29, %s1937_s26  ;;  %v838_v29 = vadd.f32 %v2879_v38, %v609_v58 }
 0x212   : > { %1036 = vrot.lane.b32.xlu2 %v910_v63, %s1937_s26  ;;  %v839_v61 = vadd.f32 %v2880_v46, %v610_v30 }
 0x215   : > { %v1043_v1 = vpop.permute.xlu2 %1042 }
 0x216   : > { %v2527_v24 = vpop.permute.xlu1 %1096 }
 0x217   : > { %v1119_v63 = vsel %vm981_vm4, %v2527_v24, %v2521_v44 }
 0x218   : > { %1163 = vrot.lane.b32.xlu0 %v2444_v4, %s1938_s29  ;;  %v1095_v4 = vpop.permute.xlu0 %1094  ;;  %v1140_v13 = vadd.f32 %v1119_v63, %v839_v61 }
 0x219   : > { %1171 = vrot.lane.b32.xlu1 %v2460_v53, %s1938_s29  ;;  %v1123_v53 = vsel %vm981_vm4, %v1109_v28, %v1111_v19  ;;  %v1138_v16 = vadd.f32 %v1095_v4, %v837_v0  ;;  %v2878_v28 = vld [vmem:[#allocation31_spill] sm:$0xff]  ;;  %v1118_v8 = vsel %vm981_vm4, %v1095_v4, %v2527_v24  ;;  %v2883_v24 = vld [vmem:[#allocation26_spill] sm:$0xff] }
 0x21a   : > { %1173 = vrot.lane.b32.xlu2 %v1007_v36, %s1938_s29  ;;  %v1146_v25 = vadd.f32 %v1123_v53, %v845_v62  ;;  %v1139_v36 = vadd.f32 %v1118_v8, %v838_v29  ;;  %v2884_v53 = vld [vmem:[#allocation30_spill] sm:$0xff] }
 0x21d   : > { %v1186_v21 = vpop.permute.xlu2 %1185 }
 0x21e   : > { %v1047_v35 = vpop.permute.xlu1 %1046 }
 0x21f   : > { %v1057_v11 = vsel %vm981_vm4, %v1047_v35, %v1049_v33  ;;  %v2881_v33 = vld [vmem:[#allocation25_spill] sm:$0xff] }
 0x220   : > { %1324 = vrot.lane.b32.xlu0 %v1141_v14, %s1938_s29  ;;  %v1045_v31 = vpop.permute.xlu0 %1044  ;;  %v1081_v39 = vadd.f32 %v1057_v11, %v796_v47  ;;  %v795_v34 = vadd.f32 %v2881_v33, %v590_v27 }
 0x221   : > { %1332 = vrot.lane.b32.xlu1 %v1145_v23, %s1938_s29  ;;  %v1056_v17 = vsel %vm981_vm4, %v1045_v31, %v1047_v35  ;;  %v1079_v3 = vadd.f32 %v1045_v31, %v2882_v26  ;;  %v2885_v35 = vld [vmem:[#allocation16_spill] sm:$0xff]  ;;  %v2890_v26 = vld [vmem:[#allocation17_spill] sm:$0xff] }
 0x222   : > { %1334 = vrot.lane.b32.xlu2 %v1146_v25, %s1938_s29  ;;  %v1080_v4 = vadd.f32 %v1056_v17, %v795_v34  ;;  %v583_v23 = vmul.f32 %v2885_v35, %v2418_v48  ;;  %v585_v47 = vmul.f32 %v2885_v35, %v2180_v57 }
 0x224   : > { %v788_v0 = vadd.f32 %v2886_v32, %v583_v23 }
 0x226   : > { %v1041_v19 = vpop.permute.xlu1 %1040 }
 0x227   : > { %v1055_v44 = vsel %vm981_vm4, %v1041_v19, %v1043_v1 }
 0x228   : > { %1318 = vrot.lane.b32.xlu0 %v1138_v16, %s1938_s29  ;;  %v1039_v15 = vpop.permute.xlu0 %1038  ;;  %v1078_v22 = vadd.f32 %v1055_v44, %v2883_v24 }
 0x229   : > { %1028 = vrot.lane.b32.xlu1 %v906_v2, %s1937_s26  ;;  %v1054_v49 = vsel %vm981_vm4, %v1039_v15, %v1041_v19  ;;  %v1076_v62 = vadd.f32 %v1039_v15, %v2884_v53 }
 0x22a   : > { %1030 = vrot.lane.b32.xlu2 %v907_v10, %s1937_s26  ;;  %v1077_v18 = vadd.f32 %v1054_v49, %v2878_v28 }
 0x22f   : > { %v1184_v43 = vpop.permute.xlu1 %1183 }
 0x230   : > { %1280 = vrot.lane.b32.xlu0 %v1081_v39, %s1938_s29  ;;  %v2565_v55 = vsel %vm1187_vm5, %v1184_v43, %v1186_v21  ;;  %v1182_v41 = vpop.permute.xlu0 %1181  ;;  %v584_v39 = vmul.f32 %v2885_v35, %v2178_v56  ;;  %v2887_v21 = vld [vmem:[#allocation29_spill] sm:$0xff]  ;;  %v2892_v35 = vld [vmem:[#allocation20_spill] sm:$0xff] }
 0x231   : > { %1165 = vrot.lane.b32.xlu1 %v2446_v12, %s1938_s29  ;;  %v842_v12 = vadd.f32 %v2877_v52, %v613_v6  ;;  %v1194_v19 = vsel %vm1187_vm5, %v1182_v41, %v1184_v43 }
 0x232   : > { %1167 = vrot.lane.b32.xlu2 %v2875_v54, %s1938_s29  ;;  %v789_v15 = vadd.f32 %v2887_v21, %v584_v39  ;;  %v2888_v54 = vld [vmem:[#allocation28_spill] sm:$0xff] }
 0x233   : > { %v1143_v7 = vadd.f32 %v1121_v59, %v842_v12  ;;  %v790_v60 = vadd.f32 %v2888_v54, %v585_v47 }
 0x238   : > { %1272 = vrot.lane.b32.xlu0 %v1077_v18, %s1938_s29 }
 0x239   : > { %1326 = vrot.lane.b32.xlu1 %v1142_v5, %s1938_s29 }
 0x23a   : > { %1328 = vrot.lane.b32.xlu2 %v1143_v7, %s1938_s29 }
 0x241   : > { %1320 = vrot.lane.b32.xlu1 %v1139_v36, %s1938_s29 }
 0x242   : > { %1322 = vrot.lane.b32.xlu2 %v1140_v13, %s1938_s29  ;;  %v1408_v13 = vld [vmem:[%s2073_s20 + $0x18] sm:$0xff] }
 0x249   : > { %1276 = vrot.lane.b32.xlu1 %v1079_v3, %s1938_s29 }
 0x24a   : > { %1278 = vrot.lane.b32.xlu2 %v1080_v4, %s1938_s29 }
 0x251   : > { %1274 = vrot.lane.b32.xlu1 %v1078_v22, %s1938_s29 }
 0x252   : > { %1270 = vrot.lane.b32.xlu2 %v1076_v62, %s1938_s29 }
 0x25a   : > { %v1337_v51 = vpop.permute.xlu0 %1336 }
 0x25c   : > { %v1341_v25 = vpop.permute.xlu2 %1340 }
 0x262   : > { %v1176_v14 = vpop.permute.xlu0 %1175 }
 0x264   : > { %v1180_v1 = vpop.permute.xlu2 %1179 }
 0x26a   : > { %v1033_v16 = vpop.permute.xlu0 %1032 }
 0x26b   : > { %v1073_v31 = vadd.f32 %v1033_v16, %v788_v0 }
 0x26c   : > { %v1037_v45 = vpop.permute.xlu2 %1036 }
 0x26d   : > { %1264 = vrot.lane.b32.xlu0 %v1073_v31, %s1938_s29 }
 0x272   : > { %v1170_v43 = vpop.permute.xlu0 %1169 }
 0x273   : > { %v1339_v2 = vpop.permute.xlu1 %1338 }
 0x274   : > { %v1348_v10 = vsel %vm1187_vm5, %v1337_v51, %v1339_v2  ;;  %v1174_v9 = vpop.permute.xlu2 %1173  ;;  %v1349_v61 = vsel %vm1187_vm5, %v1339_v2, %v1341_v25  ;;  %v2891_v51 = vld [vmem:[#allocation22_spill] sm:$0xff] }
 0x275   : > { %1210 = vrot.lane.b32.xlu0 %v1194_v19, %s1939_s30  ;;  %v1454_v19 = vld [vmem:[%s2083_s16] sm:$0xff] }
 0x27a   : > { %v1331_v52 = vpop.permute.xlu0 %1330 }
 0x27b   : > { %v1178_v11 = vpop.permute.xlu1 %1177 }
 0x27c   : > { %v1192_v48 = vsel %vm1187_vm5, %v1176_v14, %v1178_v11  ;;  %v1335_v12 = vpop.permute.xlu2 %1334  ;;  %v1193_v27 = vsel %vm1187_vm5, %v1178_v11, %v1180_v1  ;;  %v1406_v1 = vld [vmem:[%s2073_s20 + $0x8] sm:$0xff] }
 0x282   : > { %v1027_v18 = vpop.permute.xlu0 %1026 }
 0x283   : > { %v1035_v49 = vpop.permute.xlu1 %1034 }
 0x284   : > { %v1052_v6 = vsel %vm981_vm4, %v1033_v16, %v1035_v49  ;;  %v1053_v20 = vsel %vm981_vm4, %v1035_v49, %v1037_v45  ;;  %v1031_v5 = vpop.permute.xlu2 %1030 }
 0x285   : > { %v1074_v37 = vadd.f32 %v1052_v6, %v789_v15  ;;  %v1075_v59 = vadd.f32 %v1053_v20, %v790_v60 }
 0x287   : > { %1268 = vrot.lane.b32.xlu2 %v1075_v59, %s1938_s29  ;;  %1266 = vrot.lane.b32.xlu1 %v1074_v37, %s1938_s29 }
 0x28a   : > { %v1164_v58 = vpop.permute.xlu0 %1163 }
 0x28b   : > { %v1172_v57 = vpop.permute.xlu1 %1171 }
 0x28c   : > { %v1190_v56 = vsel %vm1187_vm5, %v1170_v43, %v1172_v57  ;;  %v1168_v30 = vpop.permute.xlu2 %1167  ;;  %v1191_v17 = vsel %vm1187_vm5, %v1172_v57, %v1174_v9  ;;  %v1220_v57 = vlaneseq }
 0x28d   : > { %1206 = vrot.lane.b32.xlu0 %v1190_v56, %s1939_s30  ;;  %v1150_v56 = vld [vmem:[%s2828_s6] sm:$0x77] }
 0x292   : > { %v1325_v63 = vpop.permute.xlu0 %1324 }
 0x293   : > { %v1333_v28 = vpop.permute.xlu1 %1332 }
 0x294   : > { %v1347_v33 = vsel %vm1187_vm5, %v1333_v28, %v1335_v12  ;;  %v1329_v4 = vpop.permute.xlu2 %1328  ;;  %v1346_v24 = vsel %vm1187_vm5, %v1331_v52, %v1333_v28  ;;  %v2690_v52 = vand.u32 127, %v1220_v57  ;;  %v1232_v12 = vperm.slane %v1150_v56, 0 }
 0x295   : > { %v1233_v28 = vperm.slane %v1150_v56, 4 }
 0x296   : > { %vm1222_vm6 = vcmp.lt.s32.totalorder %v2690_v52, 1  ;;  %vm1374_vm7 = vcmp.lt.s32.totalorder %v2690_v52, 127 }
 0x29a   : > { %v1319_v16 = vpop.permute.xlu0 %1318 }
 0x29b   : > { %v1029_v7 = vpop.permute.xlu1 %1028 }
 0x29c   : > { %v1050_v62 = vsel %vm981_vm4, %v1027_v18, %v1029_v7  ;;  %v1051_v41 = vsel %vm981_vm4, %v1029_v7, %v1031_v5  ;;  %v1323_v31 = vpop.permute.xlu2 %1322 }
 0x2a3   : > { %v1166_v8 = vpop.permute.xlu1 %1165 }
 0x2a4   : > { %v1189_v38 = vsel %vm1187_vm5, %v1166_v8, %v1168_v30  ;;  %v1188_v29 = vsel %vm1187_vm5, %v1164_v58, %v1166_v8  ;;  %v1279_v45 = vpop.permute.xlu2 %1278  ;;  %v1383_v58 = vperm.slane %v1150_v56, 2  ;;  %v1384_v30 = vperm.slane %v1150_v56, 6 }
 0x2a5   : > { %1212 = vrot.lane.b32.xlu2 %v1189_v38, %s1939_s30  ;;  %1204 = vrot.lane.b32.xlu1 %v1188_v29, %s1939_s30  ;;  %v2699_v29 = vperm.slane %v1232_v12, 0 }
 0x2ab   : > { %v1327_v46 = vpop.permute.xlu1 %1326 }
 0x2ac   : > { %v1344_v36 = vsel %vm1187_vm5, %v1325_v63, %v1327_v46  ;;  %v1345_v22 = vsel %vm1187_vm5, %v1327_v46, %v1329_v4  ;;  %v1271_v11 = vpop.permute.xlu2 %1270  ;;  %v2701_v63 = vperm.slane %v1233_v28, 0 }
 0x2ad   : > { %1372 = vrot.lane.b32.xlu2 %v1349_v61, %s1940_s11  ;;  %1218 = vrot.lane.b32.xlu1 %v2565_v55, %s1939_s30  ;;  %v2889_v55 = vld [vmem:[#allocation15_spill] sm:$0xff] }
 0x2ae   : > { %1360 = vrot.lane.b32.xlu0 %v1344_v36, %s1940_s11  ;;  %v580_v34 = vmul.f32 %v2889_v55, %v2426_v50  ;;  %v582_v53 = vmul.f32 %v2889_v55, %v2170_v42  ;;  %v581_v50 = vmul.f32 %v2889_v55, %v2166_v40  ;;  %v1407_v42 = vld [vmem:[%s2073_s20 + $0x10] sm:$0xff]  ;;  %v2706_v36 = vperm.slane %v1383_v58, 2 }
 0x2b0   : > { %v785_v3 = vadd.f32 %v2890_v26, %v580_v34  ;;  %v786_v14 = vadd.f32 %v2891_v51, %v581_v50  ;;  %v787_v23 = vadd.f32 %v2892_v35, %v582_v53 }
 0x2b2   : > { %v1070_v44 = vadd.f32 %v1027_v18, %v785_v3  ;;  %v1071_v32 = vadd.f32 %v1050_v62, %v786_v14  ;;  %v1072_v0 = vadd.f32 %v1051_v41, %v787_v23 }
 0x2b3   : > { %v1321_v25 = vpop.permute.xlu1 %1320 }
 0x2b4   : > { %v1342_v40 = vsel %vm1187_vm5, %v1319_v16, %v1321_v25  ;;  %v1343_v2 = vsel %vm1187_vm5, %v1321_v25, %v1323_v31 }
 0x2b5   : > { %1426 = vperm.xlu2 %1825, %v1408_v13   ;;  %1364 = vrot.lane.b32.xlu1 %v1348_v10, %s1940_s11  ;;  %v1405_v10 = vld [vmem:[%s2073_s20] sm:$0xff]  ;;  %v2708_v13 = vperm.slane %v1384_v30, 2 }
 0x2b6   : > { %1216 = vrot.lane.b32.xlu0 %v1193_v27, %s1939_s30 }
 0x2bb   : > { %v1277_v39 = vpop.permute.xlu1 %1276 }
 0x2bd   : > { %1208 = vrot.lane.b32.xlu2 %v1192_v48, %s1939_s30  ;;  %1214 = vrot.lane.b32.xlu1 %v1191_v17, %s1939_s30  ;;  %v1281_v48 = vpop.permute.xlu0 %1280 }
 0x2be   : > { %1370 = vrot.lane.b32.xlu0 %v1347_v33, %s1940_s11  ;;  %v1289_v17 = vsel %vm1187_vm5, %v1279_v45, %v1281_v48  ;;  %v1288_v33 = vsel %vm1187_vm5, %v1277_v39, %v1279_v45 }
 0x2c3   : > { %v1275_v60 = vpop.permute.xlu1 %1274 }
 0x2c5   : > { %1362 = vrot.lane.b32.xlu2 %v1346_v24, %s1940_s11  ;;  %1368 = vrot.lane.b32.xlu1 %v1345_v22, %s1940_s11  ;;  %v1273_v21 = vpop.permute.xlu0 %1272 }
 0x2c6   : > { %1258 = vrot.lane.b32.xlu0 %v1070_v44, %s1938_s29  ;;  %v1286_v16 = vsel %vm1187_vm5, %v1271_v11, %v1273_v21 }
 0x2cd   : > { %1262 = vrot.lane.b32.xlu2 %v1072_v0, %s1938_s29  ;;  %1260 = vrot.lane.b32.xlu1 %v1071_v32, %s1938_s29 }
 0x2ce   : > { %1358 = vrot.lane.b32.xlu0 %v1342_v40, %s1940_s11  ;;  %v1287_v40 = vsel %vm1187_vm5, %v1273_v21, %v1275_v60 }
 0x2d5   : > { %1421 = vperm.xlu2 %1825, %v1407_v42   ;;  %1366 = vrot.lane.b32.xlu1 %v1343_v2, %s1940_s11 }
 0x2d6   : > { %1416 = vperm.xlu0 %1822, %v1406_v1  }
 0x2dd   : > { %1457 = vperm.xlu2 %1825, %v1454_v19   ;;  %1411 = vperm.xlu1 %1826, %v1405_v10  }
 0x2df   : > { %v2679_v54 = vpop.permute.xlu0 %1264 }
 0x2e1   : > { %v2675_v47 = vpop.permute.xlu2 %1268 }
 0x2e7   : > { %v1211_v20 = vpop.permute.xlu0 %1210 }
 0x2f9   : > { %v2681_v49 = vpop.permute.xlu1 %1266 }
 0x2ff   : > { %v2677_v15 = vpop.permute.xlu2 %1212  ;;  %v2685_v59 = vpop.permute.xlu0 %1206 }
 0x307   : > { %v1373_v43 = vpop.permute.xlu2 %1372 }
 0x30f   : > { %v1427_v6 = vpop.permute.xlu2 %1426 }
 0x317   : > { %v1209_v9 = vpop.permute.xlu2 %1208  ;;  %v2683_v37 = vpop.permute.xlu1 %1204 }
 0x31f   : > { %v1219_v18 = vpop.permute.xlu1 %1218  ;;  %v1363_v7 = vpop.permute.xlu2 %1362 }
 0x320   : > { %v2692_v5 = vpop.permute.xlu0 %1360  ;;  %v1226_v8 = vsel %vm1222_vm6, %v1211_v20, %v1219_v18  ;;  %v1230_v38 = vsel %vm1222_vm6, %v1219_v18, %v1211_v20 }
 0x321   : > { %v1244_v46 = vmul.f32 %v2699_v29, %v1230_v38  ;;  %v1245_v61 = vmul.f32 %v2701_v63, %v1226_v8 }
 0x323   : > { %v1304_v3 = vadd.f32 %v1288_v33, %v1244_v46  ;;  %v1305_v4 = vadd.f32 %v1289_v17, %v1245_v61  ;;  %v1285_v33 = vsel %vm1187_vm5, %v2681_v49, %v2675_v47 }
 0x327   : > { %v1365_v27 = vpop.permute.xlu1 %1364  ;;  %v1263_v50 = vpop.permute.xlu2 %1262 }
 0x328   : > { %v1217_v55 = vpop.permute.xlu0 %1216  ;;  %v1378_v34 = vsel %vm1374_vm7, %v1365_v27, %v1373_v43  ;;  %v1382_v26 = vsel %vm1374_vm7, %v1373_v43, %v1365_v27 }
 0x329   : > { %v1395_v44 = vmul.f32 %v2706_v36, %v1378_v34  ;;  %v1396_v24 = vmul.f32 %v2708_v13, %v1382_v26  ;;  %v1225_v22 = vsel %vm1222_vm6, %v1209_v9, %v1217_v55  ;;  %v1229_v53 = vsel %vm1222_vm6, %v1217_v55, %v1209_v9 }
 0x32a   : > { %v1242_v51 = vmul.f32 %v2699_v29, %v1229_v53  ;;  %v1243_v14 = vmul.f32 %v2701_v63, %v1225_v22  ;;  %v1227_v26 = vsel %vm1222_vm6, %v2677_v15, %v2683_v37 }
 0x32b   : > { %v1403_v62 = vadd.f32 %v1395_v44, %v1304_v3  ;;  %v1404_v41 = vadd.f32 %v1396_v24, %v1305_v4 }
 0x32c   : > { %v1302_v31 = vadd.f32 %v1286_v16, %v1242_v51  ;;  %v1303_v1 = vadd.f32 %v1287_v40, %v1243_v14 }
 0x32d   : > { %v1435_v35 = vadd.f32 %v1427_v6, %v1403_v62  ;;  %v1436_v23 = vadd.f32 %v1427_v6, %v1404_v41  ;;  %v1238_v41 = vmul.f32 %v2699_v29, %v1227_v26 }
 0x32f   : > { %v1215_v25 = vpop.permute.xlu1 %1214  ;;  %v1443_v32 = vmul.f32 0.3, %v1435_v35  ;;  %v1444_v0 = vmul.f32 0.3, %v1436_v23  ;;  %v1422_v11 = vpop.permute.xlu2 %1421 }
 0x330   : > { %v1371_v42 = vpop.permute.xlu0 %1370  ;;  %v1224_v18 = vsel %vm1222_vm6, %v2685_v59, %v1215_v25 }
 0x331   : > { %v1377_v2 = vsel %vm1374_vm7, %v1363_v7, %v1371_v42  ;;  %v1381_v19 = vsel %vm1374_vm7, %v1371_v42, %v1363_v7  ;;  %v1451_v48 = vmax.f32 %v1435_v35, %v1443_v32  ;;  %v1452_v39 = vmax.f32 %v1436_v23, %v1444_v0 }
 0x332   : > { %v1393_v10 = vmul.f32 %v2706_v36, %v1377_v2  ;;  %v1394_v45 = vmul.f32 %v2708_v13, %v1381_v19  ;;  %v1228_v7 = vsel %vm1222_vm6, %v1215_v25, %v2685_v59  ;;  %v1241_v61 = vmul.f32 %v2701_v63, %v1224_v18 }
 0x333   : > { %1476 = vmatpush.msrb.mxu2 %v1451_v48  ;;  %1496 = vmatpush.msrb.mxu3 %v1452_v39  ;;  %v1240_v46 = vmul.f32 %v2699_v29, %v1228_v7  ;;  %v1284_v59 = vsel %vm1187_vm5, %v2679_v54, %v2681_v49 }
 0x334   : > { %v1401_v43 = vadd.f32 %v1393_v10, %v1302_v31  ;;  %v1402_v6 = vadd.f32 %v1394_v45, %v1303_v1  ;;  %v1301_v34 = vadd.f32 %v1285_v33, %v1241_v61  ;;  %v1453_v1 = vld [vmem:[%s2078_s22] sm:$0xff] }
 0x335   : > { %v1300_v55 = vadd.f32 %v1284_v59, %v1240_v46 }
 0x336   : > { %v1433_v21 = vadd.f32 %v1422_v11, %v1401_v43  ;;  %v1434_v60 = vadd.f32 %v1422_v11, %v1402_v6  ;;  %v1827_v11 = vld [vmem:[#allocation2] sm:$0xff] }
 0x337   : > { %v1369_v20 = vpop.permute.xlu1 %1368 }
 0x338   : > { %v1259_v9 = vpop.permute.xlu0 %1258  ;;  %v1441_v57 = vmul.f32 0.3, %v1433_v21  ;;  %v1442_v56 = vmul.f32 0.3, %v1434_v60  ;;  %v1376_v30 = vsel %vm1374_vm7, %v2692_v5, %v1369_v20  ;;  %v1380_v8 = vsel %vm1374_vm7, %v1369_v20, %v2692_v5 }
 0x339   : > { %v1391_v27 = vmul.f32 %v2706_v36, %v1376_v30  ;;  %v1392_v17 = vmul.f32 %v2708_v13, %v1380_v8  ;;  %v1223_v5 = vsel %vm1222_vm6, %v2683_v37, %v2677_v15 }
 0x33a   : > { %v1449_v12 = vmax.f32 %v1433_v21, %v1441_v57  ;;  %v1450_v28 = vmax.f32 %v1434_v60, %v1442_v56  ;;  %v1239_v15 = vmul.f32 %v2701_v63, %v1223_v5  ;;  %v1828_v60 = vld [vmem:[#allocation2 + $0x8] sm:$0xff] }
 0x33b   : > { %v1399_v3 = vadd.f32 %v1391_v27, %v1300_v55  ;;  %v1400_v4 = vadd.f32 %v1392_v17, %v1301_v34 }
 0x33c   : > { %1477 = vmatpush.msrb.mxu2 %v1449_v12  ;;  %1497 = vmatpush.msrb.mxu3 %v1450_v28 }
 0x33f   : > { %v1261_v58 = vpop.permute.xlu1 %1260 }
 0x340   : > { %v1359_v38 = vpop.permute.xlu0 %1358  ;;  %v1282_v49 = vsel %vm1187_vm5, %v1259_v9, %v1261_v58  ;;  %v1283_v22 = vsel %vm1187_vm5, %v1261_v58, %v1263_v50 }
 0x341   : > { %v1298_v23 = vadd.f32 %v1282_v49, %v1238_v41  ;;  %v1299_v52 = vadd.f32 %v1283_v22, %v1239_v15 }
 0x347   : > { %v1367_v44 = vpop.permute.xlu1 %1366 }
 0x348   : > { %v1417_v54 = vpop.permute.xlu0 %1416  ;;  %v1375_v24 = vsel %vm1374_vm7, %v1359_v38, %v1367_v44  ;;  %v1379_v47 = vsel %vm1374_vm7, %v1367_v44, %v1359_v38 }
 0x349   : > { %v1431_v53 = vadd.f32 %v1417_v54, %v1399_v3  ;;  %v1432_v62 = vadd.f32 %v1417_v54, %v1400_v4  ;;  %v1389_v37 = vmul.f32 %v2706_v36, %v1375_v24  ;;  %v1390_v51 = vmul.f32 %v2708_v13, %v1379_v47  ;;  %v1458_v13 = vpop.permute.xlu2 %1457 }
 0x34b   : > { %v1439_v14 = vmul.f32 0.3, %v1431_v53  ;;  %v1440_v35 = vmul.f32 0.3, %v1432_v62  ;;  %v1397_v0 = vadd.f32 %v1389_v37, %v1298_v23  ;;  %v1398_v16 = vadd.f32 %v1390_v51, %v1299_v52 }
 0x34d   : > { %v1447_v25 = vmax.f32 %v1431_v53, %v1439_v14  ;;  %v1448_v32 = vmax.f32 %v1432_v62, %v1440_v35 }
 0x34f   : > { %1478 = vmatpush.msrb.mxu2 %v1447_v25  ;;  %1498 = vmatpush.msrb.mxu3 %v1448_v32  ;;  %v1412_v50 = vpop.permute.xlu1 %1411 }
 0x350   : > { %v1429_v40 = vadd.f32 %v1412_v50, %v1397_v0  ;;  %v1430_v29 = vadd.f32 %v1412_v50, %v1398_v16 }
 0x352   : > { %v1437_v42 = vmul.f32 0.3, %v1429_v40  ;;  %v1438_v63 = vmul.f32 0.3, %v1430_v29 }
 0x354   : > { %v1445_v31 = vmax.f32 %v1429_v40, %v1437_v42  ;;  %v1446_v36 = vmax.f32 %v1430_v29, %v1438_v63 }
 0x356   : > { %1479 = vmatpush.msrb.mxu2 %v1445_v31  ;;  %1499 = vmatpush.msrb.mxu3 %v1446_v36 }
 0x357   : > { %1696 = vmatmul.msk.f32.vlgmr.msrb.gmra.mxu2 %vm1460_vm8, %v1453_v1  ;;  %1697 = vmatmul.msk.f32.vlgmr.msrb.gmra.mxu3 %vm1460_vm8, %v1453_v1 }
 0x3da   : > { %v1481_v2 = vpop.f32.mrf.mxu2  ;;  %v1501_v19 = vpop.f32.mrf.mxu3 }
 0x3db   : > { %v1482_v10 = vadd.f32 %v1481_v2, %v1458_v13  ;;  %v1502_v45 = vadd.f32 %v1501_v19, %v1458_v13 }
 0x3dd   : > { %v1504_v48 = vmul.f32 0.3, %v1482_v10  ;;  %v1505_v39 = vmul.f32 0.3, %v1502_v45  ;;  %1513 = sbr.rel (%p1698_p1) target bundleno = 997 (0x3e5), region = 56 }
 0x3df   : > { %v1506_v43 = vmax.f32 %v1482_v10, %v1504_v48  ;;  %v1507_v6 = vmax.f32 %v1502_v45, %v1505_v39 }
 0x3e1   : > { %v1508_v21 = vadd.f32 %v1827_v11, %v1506_v43  ;;  %v1509_v20 = vadd.f32 %v1828_v60, %v1507_v6 }
 0x3e3   : > { %1514 = vst [vmem:[#allocation2] sm:$0xff] %v1508_v21 }
 0x3e4   : > { %1515 = vst [vmem:[#allocation2 + $0x8] sm:$0xff] %v1509_v20 }
 0x3e5 PF: > { %p1699_p2 = scmp.ne.s32.totalorder %s1907_s27, 1 }
 0x3e7   : > { %1519 = sbr.rel (%p1699_p2) target bundleno = 1006 (0x3ee), region = 60 }
 0x3ec   : > { %1520 = vst [vmem:[%s2085_s0] sm:$0xff] %v1508_v21 }
 0x3ed   : > { %1521 = vst [vmem:[%s2085_s0 + $0x8] sm:$0xff] %v1509_v20 }
 0x3ee PF: > { %s1709_s18 = sshll.u32 %s1911_s28, 4  ;;  %s1536_s15 = sshll.u32 %s2085_s0, 4  ;;  %s1537_s15 = int_to_ptr.vmem [resolvable:$true] %s1536_s15 }
 0x3ef   : > { %s1534_s10 = scalar_lea.hbm %s2829_s7, %s1709_s18  ;;  %s2893_s27 = sand.u32 1, %s1899_s25  }
 0x3f0   : > { %s1538_s20 = sshll.u32 %s1534_s10, 4  ;;  %s1523_s23 = scalar_lea.sflag [#allocation5], %s2893_s27  ;;  %s1539_s20 = int_to_ptr.hbm [resolvable:$true] %s1538_s20 }
 0x3f1   : > { %s1843_s22 = sshra.s32 %s1539_s20, 4  ;;  %s1849_s28 = scalar_lea.hbm %s2829_s7, 32  ;;  %s1844_s22 = int_to_ptr.hbm [resolvable:$true] %s1843_s22 }
 0x3f2   : > { %s1845_s9 = scalar_lea.hbm %s1844_s22, 16  ;;  %p1850_p7 = scmp.lt.s32.totalorder %s1844_s22, %s2829_s7 }
 0x3f3   : > { %p1846_p4 = scmp.ne.s32.totalorder %s1844_s22, %s1845_s9  ;;  %p1851_p8 = scmp.lt.s32.totalorder %s1849_s28, %s1845_s9 }
 0x3f5   : > { %p1847_p5 = pnand %p1846_p4, %p2030_p3  ;;  %p1852_p10 = por %p1851_p8, %p1850_p7 }
 0x3f7   : > { %p1848_p6 = pneg %p1847_p5 }
 0x3f9   : > { %p1853_p11 = pnand %p1852_p10, %p1848_p6 }
 0x3fb   : > { %1856 = shalt.err (!%p1853_p11)
}
 0x3fc   : > { %1714 = dma.vmem_to_hbm [thread:$0]  (%p2030_p3), %s1537_s15, 256, %s1539_s20, %s1523_s23  }
 0x3fd PF: > { %s2894_s0 = sld [smem:[#allocation7_spill]]  ;;  %p1720_p12 = scmp.ge.s32.totalorder %s1923_s8, 2 }
 0x3ff   : > { %p1717_p13 = pnand %p1720_p12, %p2040_p9 }
 0x401   : > { %p1718_p0 = pneg %p1717_p13 }
 0x403   : > { %s1550_s30 = sand.u32 1, %s2894_s0  }
 0x404   : > { %s1551_s11 = scalar_lea.sflag [#allocation5], %s1550_s30 }
 0x405   : > { %1890 = dma.done.wait (%p1718_p0), %s1551_s11, 256  }
 0x406   : > { %1892 = vsyncadd (%p1718_p0), %s1551_s11, 4294967040  ;;  %s20_s8 = sadd.s32 1, %s1923_s8   ;;  %s2896_s14 = sld [smem:[#allocation8_spill]] }
 0x407   : > { %p17_p1 = scmp.ge.s32.totalorder %s20_s8, 6   ;;  %s2897_s26 = sld [smem:[#allocation14_spill]] }
 0x408   : > { %s2898_s27 = sld [smem:[#allocation9_spill]]  ;;  %s2902_s24 = smov %s1899_s25 }
 0x409   : > { %s2899_s28 = sld [smem:[#allocation10_spill]]  ;;  %19 = sbr.rel (!%p17_p1) target bundleno = 7 (0x7), region = 111 }
 0x40a   : > { %s2900_s29 = sld [smem:[#allocation11_spill]] }
 0x40b   : > { %s2901_s30 = sld [smem:[#allocation12_spill]] }
 0x40c   : > { %s2903_s25 = smov %s2896_s14 }
 0x40e   :  { %1557 = vsyncpa [#allocation5], 1 }
 0x40f   :  { %1559 = vsyncpa [#allocation5 + $0x1], 1 }

</bundles_post_ra>
